<compile_context>
chip_gen: v5e
topology: v5e:2x2
jax: 0.10.0
libtpu: 0.0.40
codegen_flags: <defaults>
</compile_context>

<pallas_src>
import math
import numpy as np
import jax
import jax.numpy as jnp
from jax.experimental import pallas as pl
from jax.experimental.pallas import tpu as pltpu

# ----------------------------- config (small) -----------------------------
BATCH = 2
CHANNELS = 3
IMAGE = 16
PATCH = 8
HIDDEN = 32
NUM_HEADS = 2
HEAD_DIM = HIDDEN // NUM_HEADS
INTERMEDIATE = 64
NUM_LAYERS = 2
NUM_CLASSES = 10
NUM_PATCHES = (IMAGE // PATCH) ** 2          # 4
SEQ = NUM_PATCHES + 1                        # +1 CLS token -> 5
SEQP = 8                                     # seq padded to a sublane multiple
PATCH_DIM = CHANNELS * PATCH * PATCH         # 192
LN_EPS = 1e-12                               # HF ViT default layer_norm_eps

# lane-dense padded sizes (one full 128-lane block each)
HP = 128                                     # padded hidden
IP = 128                                     # padded MLP intermediate
CP = 128                                     # padded classifier output
QKVP = 3 * HP                                # fused q|k|v projection width
W1_OFF = QKVP                                # 384
W2_OFF = QKVP + IP                           # 512
WO_OFF = QKVP + IP + HP                      # 640
SLAB = WO_OFF + HP                           # 768  (per-layer weight slab width)


# ----------------------------- fused ViT kernel -----------------------------
def vit_fused(packed, xp_rows, base_rows, attn_bias):
    """xp_rows:  [B*SEQP, PATCH_DIM]  (CLS/pad rows are zero)
       base_rows:[B*SEQP, HP]         (cls+pos0 / patch_b+pos_i / zeros)
       attn_bias:[B*SEQP, B*SEQP]     (0 on same-batch valid keys, -1e30 else)
       Returns lane-padded logits [B*SEQP, CP] (CLS rows at b*SEQP)."""
    rows = xp_rows.shape[0]
    f32 = jnp.float32

    def kernel(xp_ref, pw_ref, base_ref, bias_ref, w_ref, lv_ref, fv_ref,
               hw_ref, logits_ref, h_vmem):
        l = pl.program_id(0)

        # Valid-hidden-lane mask for LayerNorm statistics (cheap VPU work).
        lane = jax.lax.broadcasted_iota(jnp.int32, (rows, HP), 1)
        feat_mask = (lane < HIDDEN).astype(f32)
        inv_h = 1.0 / HIDDEN

        def layer_norm(xv, g, b):
            # padded lanes of xv are zero -> sums over all HP lanes are exact
            mean = jnp.sum(xv, axis=-1, keepdims=True) * inv_h
            diff = (xv - mean) * feat_mask
            var = jnp.sum(diff * diff, axis=-1, keepdims=True) * inv_h
            return diff * jax.lax.rsqrt(var + LN_EPS) * g + b

        # ---- layer 0 only: patch embedding + CLS + position embeddings ----
        @pl.when(l == 0)
        def _():
            h_vmem[...] = (jnp.dot(xp_ref[...], pw_ref[...],
                                   preferred_element_type=f32) + base_ref[...])

        h = h_vmem[...]                                       # (rows, HP)

        # packed per-layer row vectors
        lv = lv_ref[0]                                        # (8, QKVP)
        bqkv = lv[0:1, :]
        ln1_g, ln1_b = lv[1:2, :HP], lv[2:3, :HP]
        bo = lv[3:4, :HP]
        ln2_g, ln2_b = lv[4:5, :HP], lv[5:6, :HP]
        b1, b2 = lv[6:7, :HP], lv[7:8, :HP]

        # ---- self-attention (pre-LN), fused QKV, block-diagonal batch mask ----
        hn = layer_norm(h, ln1_g, ln1_b)
        qkv = (jnp.dot(hn, w_ref[0, :, 0:QKVP],
                       preferred_element_type=f32) + bqkv)    # (rows, QKVP)
        bias = bias_ref[...]                                  # (rows, rows)
        scale = 1.0 / math.sqrt(HEAD_DIM)

        attn = bo                                             # (1, HP) broadcast
        for head in range(NUM_HEADS):
            c = head * HEAD_DIM
            qh = qkv[:, 0 * HP + c: 0 * HP + c + HEAD_DIM]    # (rows, HEAD_DIM)
            kh = qkv[:, 1 * HP + c: 1 * HP + c + HEAD_DIM]
            vh = qkv[:, 2 * HP + c: 2 * HP + c + HEAD_DIM]
            s = jax.lax.dot_general(qh, kh, (((1,), (1,)), ((), ())),
                                    preferred_element_type=f32) * scale
            s = s + bias                                      # mask cross-batch/pad keys
            m = jnp.max(s, axis=-1, keepdims=True)
            p = jnp.exp(s - m)
            p = p * pl.reciprocal(jnp.sum(p, axis=-1, keepdims=True), approx=True)
            oh = jnp.dot(p, vh, preferred_element_type=f32)   # (rows, HEAD_DIM)
            # per-head slice of Wo (== concat(heads) @ Wo)
            attn = attn + jnp.dot(
                oh, w_ref[0, c: c + HEAD_DIM, WO_OFF:WO_OFF + HP],
                preferred_element_type=f32)                   # (rows, HP)
        h = h + attn

        # ---- MLP (pre-LN) ----
        hn2 = layer_norm(h, ln2_g, ln2_b)
        m1 = (jnp.dot(hn2, w_ref[0, :, W1_OFF:W1_OFF + IP],
                      preferred_element_type=f32) + b1)
        # TODO(synk): HF ViT uses exact erf-GELU; tanh approximation keeps a
        # guaranteed EUP lowering (difference ~1e-3).
        m1 = jax.nn.gelu(m1, approximate=True)
        h = h + (jnp.dot(m1, w_ref[0, :, W2_OFF:W2_OFF + HP],
                         preferred_element_type=f32) + b2)
        h_vmem[...] = h

        # ---- last layer only: final LN + classifier head (one full-block store) ----
        @pl.when(l == NUM_LAYERS - 1)
        def _():
            fv = fv_ref[...]                                  # (8, HP)
            hf = layer_norm(h, fv[0:1, :], fv[1:2, :])
            logits_ref[...] = (jnp.dot(hf, hw_ref[...],
                                       preferred_element_type=f32) + fv[2:3, :])

    const2 = lambda shape: pl.BlockSpec(shape, lambda l: (0, 0))
    per_layer = lambda shape: pl.BlockSpec(shape, lambda l: (l, 0, 0))

    return pl.pallas_call(
        kernel,
        out_shape=jax.ShapeDtypeStruct((rows, CP), jnp.float32),
        grid_spec=pltpu.PrefetchScalarGridSpec(
            num_scalar_prefetch=0,
            grid=(NUM_LAYERS,),
            in_specs=[
                const2((rows, PATCH_DIM)),       # patches (CLS/pad rows zero)
                const2((PATCH_DIM, HP)),         # patch-embed weight
                const2((rows, HP)),              # cls/pos/patch-bias baseline
                const2((rows, rows)),            # block-diagonal attention bias
                per_layer((1, HP, SLAB)),        # packed per-layer weight slab
                per_layer((1, 8, QKVP)),         # packed per-layer row vectors
                const2((8, HP)),                 # final LN gamma/beta + head bias
                const2((HP, CP)),                # classifier weight
            ],
            out_specs=pl.BlockSpec((rows, CP), lambda l: (0, 0)),
            scratch_shapes=[pltpu.VMEM((rows, HP), jnp.float32)],
        ),
        compiler_params=pltpu.CompilerParams(
            dimension_semantics=("arbitrary",)),
    )(xp_rows, packed["pw"], base_rows, attn_bias,
      packed["wslab"], packed["lvec"], packed["fvec"], packed["hw"])


# ----------------------------- parameter init -----------------------------
def init_params(key):
    def nrm(k, shape, std=0.02):
        return jax.random.normal(k, shape, dtype=jnp.float32) * std

    keys = jax.random.split(key, 8 + NUM_LAYERS)
    params = {
        "patch_w": nrm(keys[0], (PATCH_DIM, HIDDEN)),
        "patch_b": jnp.zeros((HIDDEN,), jnp.float32),
        "cls": nrm(keys[1], (1, 1, HIDDEN)),
        "pos": nrm(keys[2], (1, SEQ, HIDDEN)),
        "lnf_g": jnp.ones((HIDDEN,), jnp.float32),
        "lnf_b": jnp.zeros((HIDDEN,), jnp.float32),
        "head_w": nrm(keys[3], (HIDDEN, NUM_CLASSES)),
        "head_b": jnp.zeros((NUM_CLASSES,), jnp.float32),
        "layers": [],
    }
    for l in range(NUM_LAYERS):
        lk = jax.random.split(keys[8 + l], 6)
        params["layers"].append({
            "ln1_g": jnp.ones((HIDDEN,), jnp.float32),
            "ln1_b": jnp.zeros((HIDDEN,), jnp.float32),
            "wq": nrm(lk[0], (HIDDEN, HIDDEN)), "bq": jnp.zeros((HIDDEN,), jnp.float32),
            "wk": nrm(lk[1], (HIDDEN, HIDDEN)), "bk": jnp.zeros((HIDDEN,), jnp.float32),
            "wv": nrm(lk[2], (HIDDEN, HIDDEN)), "bv": jnp.zeros((HIDDEN,), jnp.float32),
            "wo": nrm(lk[3], (HIDDEN, HIDDEN)), "bo": jnp.zeros((HIDDEN,), jnp.float32),
            "ln2_g": jnp.ones((HIDDEN,), jnp.float32),
            "ln2_b": jnp.zeros((HIDDEN,), jnp.float32),
            "w1": nrm(lk[4], (HIDDEN, INTERMEDIATE)), "b1": jnp.zeros((INTERMEDIATE,), jnp.float32),
            "w2": nrm(lk[5], (INTERMEDIATE, HIDDEN)), "b2": jnp.zeros((HIDDEN,), jnp.float32),
        })
    return params


def pack_params(params):
    """Zero-pad to lane-dense 128-wide blocks, fuse QKV, pack each layer's
    matrices into one (HP, SLAB) slab and its row vectors into one (8, QKVP)
    block, stacked along a leading layer dim (done once, outside the forward)."""
    f32 = jnp.float32

    def stack(fn):
        return jnp.stack([fn(lp) for lp in params["layers"]], axis=0)

    pos = params["pos"][0]                        # (SEQ, HIDDEN)
    cls = params["cls"][0, 0]                     # (HIDDEN,)
    base = jnp.zeros((SEQP, HP), f32)
    base = base.at[0, :HIDDEN].set(cls + pos[0])
    base = base.at[1:SEQ, :HIDDEN].set(params["patch_b"][None, :] + pos[1:])

    def wslab(lp):
        s = jnp.zeros((HP, SLAB), f32)
        s = s.at[:HIDDEN, 0 * HP:0 * HP + HIDDEN].set(lp["wq"])
        s = s.at[:HIDDEN, 1 * HP:1 * HP + HIDDEN].set(lp["wk"])
        s = s.at[:HIDDEN, 2 * HP:2 * HP + HIDDEN].set(lp["wv"])
        s = s.at[:HIDDEN, W1_OFF:W1_OFF + INTERMEDIATE].set(lp["w1"])
        s = s.at[:INTERMEDIATE, W2_OFF:W2_OFF + HIDDEN].set(lp["w2"])
        s = s.at[:HIDDEN, WO_OFF:WO_OFF + HIDDEN].set(lp["wo"])
        return s

    def lvec(lp):
        v = jnp.zeros((8, QKVP), f32)
        v = v.at[0, 0 * HP:0 * HP + HIDDEN].set(lp["bq"])
        v = v.at[0, 1 * HP:1 * HP + HIDDEN].set(lp["bk"])
        v = v.at[0, 2 * HP:2 * HP + HIDDEN].set(lp["bv"])
        v = v.at[1, :HIDDEN].set(lp["ln1_g"])
        v = v.at[2, :HIDDEN].set(lp["ln1_b"])
        v = v.at[3, :HIDDEN].set(lp["bo"])
        v = v.at[4, :HIDDEN].set(lp["ln2_g"])
        v = v.at[5, :HIDDEN].set(lp["ln2_b"])
        v = v.at[6, :INTERMEDIATE].set(lp["b1"])
        v = v.at[7, :HIDDEN].set(lp["b2"])
        return v

    fvec = jnp.zeros((8, HP), f32)
    fvec = fvec.at[0, :HIDDEN].set(params["lnf_g"])
    fvec = fvec.at[1, :HIDDEN].set(params["lnf_b"])
    fvec = fvec.at[2, :NUM_CLASSES].set(params["head_b"])

    pw = jnp.zeros((PATCH_DIM, HP), f32).at[:, :HIDDEN].set(params["patch_w"])
    hw = jnp.zeros((HP, CP), f32).at[:HIDDEN, :NUM_CLASSES].set(params["head_w"])

    return {"pw": pw, "base": base, "wslab": stack(wslab), "lvec": stack(lvec),
            "fvec": fvec, "hw": hw}


# ----------------------------- forward pass -----------------------------
def custom_vit_forward(packed, x):
    """x: [B, C, H, W] (NCHW, PyTorch convention). Returns logits [B, NUM_CLASSES]."""
    B, C, H, W = x.shape
    P = PATCH
    # Patchify (layout-only JAX glue): flatten order (C, ph, pw) matches
    # Conv2d(kernel=P, stride=P) weight.reshape(HIDDEN, C*P*P).T.
    xp = x.reshape(B, C, H // P, P, W // P, P)
    xp = xp.transpose(0, 2, 4, 1, 3, 5).reshape(B, NUM_PATCHES, PATCH_DIM)
    # Pad each sequence to SEQP rows (row 0 = CLS slot, rows >= SEQ = padding)
    # and flatten batch*seq so every in-kernel matmul sees (B*SEQP, ...) rows.
    xp_rows = jnp.zeros((B, SEQP, PATCH_DIM), xp.dtype)
    xp_rows = xp_rows.at[:, 1:SEQ, :].set(xp).reshape(B * SEQP, PATCH_DIM)
    base_rows = jnp.tile(packed["base"], (B, 1))              # (B*SEQP, HP)

    # Block-diagonal attention bias (compile-time constant): only same-batch,
    # non-padded key positions are attendable.
    r = np.arange(B * SEQP)
    same_batch = (r[:, None] // SEQP) == (r[None, :] // SEQP)
    valid_key = (r[None, :] % SEQP) < SEQ
    attn_bias = jnp.asarray(
        np.where(same_batch & valid_key, 0.0, -1e30), dtype=jnp.float32)

    logits_rows = vit_fused(packed, xp_rows, base_rows, attn_bias)  # (B*SEQP, CP)
    return logits_rows.reshape(B, SEQP, CP)[:, 0, :NUM_CLASSES]


# ----------------------------- pure-JAX reference -----------------------------
def vit_reference(params, x):
    B = x.shape[0]
    P = PATCH
    xp = x.reshape(B, CHANNELS, IMAGE // P, P, IMAGE // P, P)
    xp = xp.transpose(0, 2, 4, 1, 3, 5).reshape(B, NUM_PATCHES, PATCH_DIM)
    emb = xp @ params["patch_w"] + params["patch_b"]
    cls = jnp.broadcast_to(params["cls"], (B, 1, HIDDEN))
    h = jnp.concatenate([cls, emb], axis=1) + params["pos"]

    def ln(v, g, b):
        m = v.mean(-1, keepdims=True)
        var = ((v - m) ** 2).mean(-1, keepdims=True)
        return (v - m) / jnp.sqrt(var + LN_EPS) * g + b

    scale = 1.0 / math.sqrt(HEAD_DIM)
    for lp in params["layers"]:
        hn = ln(h, lp["ln1_g"], lp["ln1_b"])
        q = hn @ lp["wq"] + lp["bq"]
        k = hn @ lp["wk"] + lp["bk"]
        v = hn @ lp["wv"] + lp["bv"]

        def split(t):
            return t.reshape(B, SEQ, NUM_HEADS, HEAD_DIM).transpose(0, 2, 1, 3)

        qh, kh, vh = split(q), split(k), split(v)
        s = jnp.einsum("bhqd,bhkd->bhqk", qh, kh) * scale
        p = jax.nn.softmax(s, axis=-1)
        o = jnp.einsum("bhqk,bhkd->bhqd", p, vh)
        o = o.transpose(0, 2, 1, 3).reshape(B, SEQ, HIDDEN)
        h = h + o @ lp["wo"] + lp["bo"]
        hn2 = ln(h, lp["ln2_g"], lp["ln2_b"])
        m1 = jax.nn.gelu(hn2 @ lp["w1"] + lp["b1"], approximate=True)
        h = h + m1 @ lp["w2"] + lp["b2"]
    hf = ln(h, params["lnf_g"], params["lnf_b"])
    return hf[:, 0] @ params["head_w"] + params["head_b"]


# ----------------------------- main -----------------------------
if __name__ == "__main__":
    key = jax.random.PRNGKey(0)
    pkey, xkey = jax.random.split(key)
    params = init_params(pkey)
    packed = pack_params(params)
    x = jax.random.normal(xkey, (BATCH, CHANNELS, IMAGE, IMAGE), dtype=jnp.float32)

    logits = jax.jit(custom_vit_forward)(packed, x)
    jax.block_until_ready(logits)
    assert logits.shape == (BATCH, NUM_CLASSES)
    assert bool(jnp.all(jnp.isfinite(logits)))

    ref = vit_reference(params, x)
    assert bool(jnp.allclose(logits, ref, rtol=5e-2, atol=5e-3)), (
        "max abs diff vs reference: "
        f"{float(jnp.max(jnp.abs(logits - ref)))}")
    print("KERNEL_OK")
</pallas_src>

<mosaic_0001>
module attributes {stable_mosaic.version = 11 : i64} {
  func.func @kernel(%arg0: i32, %arg1: memref<16x192xf32, #tpu.memory_space<vmem>>, %arg2: memref<192x128xf32, #tpu.memory_space<vmem>>, %arg3: memref<16x128xf32, #tpu.memory_space<vmem>>, %arg4: memref<16x16xf32, #tpu.memory_space<vmem>>, %arg5: memref<1x128x768xf32, #tpu.memory_space<vmem>>, %arg6: memref<1x8x384xf32, #tpu.memory_space<vmem>>, %arg7: memref<8x128xf32, #tpu.memory_space<vmem>>, %arg8: memref<128x128xf32, #tpu.memory_space<vmem>>, %arg9: memref<16x128xf32, #tpu.memory_space<vmem>>, %arg10: memref<16x128xf32, #tpu.memory_space<vmem>>) attributes {dimension_semantics = [#tpu.dimension_semantics<arbitrary>], iteration_bounds = array<i64: 2>, scalar_prefetch = 0 : i64, scratch_operands = 1 : i64, tpu.core_type = #tpu.core_type<tc>, window_params = [{pipeline_mode = #tpu.pipeline_mode<synchronous>, transform_indices = @transform_0, window_bounds = array<i64: 16, 192>}, {pipeline_mode = #tpu.pipeline_mode<synchronous>, transform_indices = @transform_1, window_bounds = array<i64: 192, 128>}, {pipeline_mode = #tpu.pipeline_mode<synchronous>, transform_indices = @transform_2, window_bounds = array<i64: 16, 128>}, {pipeline_mode = #tpu.pipeline_mode<synchronous>, transform_indices = @transform_3, window_bounds = array<i64: 16, 16>}, {transform_indices = @transform_4, window_bounds = array<i64: 1, 128, 768>}, {transform_indices = @transform_5, window_bounds = array<i64: 1, 8, 384>}, {pipeline_mode = #tpu.pipeline_mode<synchronous>, transform_indices = @transform_6, window_bounds = array<i64: 8, 128>}, {pipeline_mode = #tpu.pipeline_mode<synchronous>, transform_indices = @transform_7, window_bounds = array<i64: 128, 128>}, {pipeline_mode = #tpu.pipeline_mode<synchronous>, transform_indices = @transform_8, window_bounds = array<i64: 16, 128>}]} {
    %0 = tpu.iota {dimensions = array<i32: 1>} : vector<16x128xi32>
    %c32_i32 = arith.constant 32 : i32
    %1 = vector.broadcast %c32_i32 : i32 to vector<16x128xi32>
    %2 = arith.cmpi slt, %0, %1 : vector<16x128xi32>
    %3 = arith.extui %2 : vector<16x128xi1> to vector<16x128xi32>
    %4 = arith.sitofp %3 : vector<16x128xi32> to vector<16x128xf32>
    %c0_i32 = arith.constant 0 : i32
    %5 = arith.cmpi eq, %arg0, %c0_i32 : i32
    %6 = arith.extui %5 : i1 to i32
    %c0_i32_0 = arith.constant 0 : i32
    %7 = arith.cmpi ne, %6, %c0_i32_0 : i32
    scf.if %7 {
      %c0_49 = arith.constant 0 : index
      %c0_50 = arith.constant 0 : index
      %141 = vector.load %arg1[%c0_49, %c0_50] : memref<16x192xf32, #tpu.memory_space<vmem>>, vector<16x192xf32>
      %c0_51 = arith.constant 0 : index
      %c0_52 = arith.constant 0 : index
      %142 = vector.load %arg2[%c0_51, %c0_52] : memref<192x128xf32, #tpu.memory_space<vmem>>, vector<192x128xf32>
      %cst_53 = arith.constant dense<0.000000e+00> : vector<16x128xf32>
      %143 = tpu.matmul %141, %142, %cst_53 {dimension_numbers = #tpu.dot_dimension_numbers<[1], [0], [0], [1], [0, 0, 1, 1], [], []>} : vector<16x192xf32>, vector<192x128xf32>, vector<16x128xf32> -> vector<16x128xf32>
      %c0_54 = arith.constant 0 : index
      %c0_55 = arith.constant 0 : index
      %144 = vector.load %arg3[%c0_54, %c0_55] : memref<16x128xf32, #tpu.memory_space<vmem>>, vector<16x128xf32>
      %145 = arith.addf %143, %144 : vector<16x128xf32>
      %c0_56 = arith.constant 0 : index
      %c0_57 = arith.constant 0 : index
      %146 = vector.load %arg10[%c0_56, %c0_57] : memref<16x128xf32, #tpu.memory_space<vmem>>, vector<16x128xf32>
      tpu.vector_store %arg10[%c0_56, %c0_57], %145 {strides = array<i32>} : memref<16x128xf32, #tpu.memory_space<vmem>>, vector<16x128xf32>,
    } else {
    }
    %c0 = arith.constant 0 : index
    %c0_1 = arith.constant 0 : index
    %8 = vector.load %arg10[%c0, %c0_1] : memref<16x128xf32, #tpu.memory_space<vmem>>, vector<16x128xf32>
    %c0_2 = arith.constant 0 : index
    %c0_3 = arith.constant 0 : index
    %c0_4 = arith.constant 0 : index
    %9 = vector.load %arg6[%c0_2, %c0_3, %c0_4] : memref<1x8x384xf32, #tpu.memory_space<vmem>>, vector<1x8x384xf32>
    %10 = vector.shape_cast %9 : vector<1x8x384xf32> to vector<8x384xf32>
    %11 = vector.extract_strided_slice %10 {offsets = [0, 0], sizes = [1, 384], strides = [1, 1]} : vector<8x384xf32> to vector<1x384xf32>
    %12 = vector.extract_strided_slice %10 {offsets = [1, 0], sizes = [1, 128], strides = [1, 1]} : vector<8x384xf32> to vector<1x128xf32>
    %13 = vector.extract_strided_slice %10 {offsets = [2, 0], sizes = [1, 128], strides = [1, 1]} : vector<8x384xf32> to vector<1x128xf32>
    %14 = vector.extract_strided_slice %10 {offsets = [3, 0], sizes = [1, 128], strides = [1, 1]} : vector<8x384xf32> to vector<1x128xf32>
    %15 = vector.extract_strided_slice %10 {offsets = [4, 0], sizes = [1, 128], strides = [1, 1]} : vector<8x384xf32> to vector<1x128xf32>
    %16 = vector.extract_strided_slice %10 {offsets = [5, 0], sizes = [1, 128], strides = [1, 1]} : vector<8x384xf32> to vector<1x128xf32>
    %17 = vector.extract_strided_slice %10 {offsets = [6, 0], sizes = [1, 128], strides = [1, 1]} : vector<8x384xf32> to vector<1x128xf32>
    %18 = vector.extract_strided_slice %10 {offsets = [7, 0], sizes = [1, 128], strides = [1, 1]} : vector<8x384xf32> to vector<1x128xf32>
    %cst = arith.constant dense<0.000000e+00> : vector<16xf32>
    %19 = vector.multi_reduction <add>, %8, %cst [1] : vector<16x128xf32> to vector<16xf32>
    %20 = vector.shape_cast %19 : vector<16xf32> to vector<16x1xf32>
    %cst_5 = arith.constant 3.125000e-02 : f32
    %21 = vector.broadcast %cst_5 : f32 to vector<16x1xf32>
    %22 = arith.mulf %20, %21 : vector<16x1xf32>
    %23 = vector.broadcast %22 : vector<16x1xf32> to vector<16x128xf32>
    %24 = arith.subf %8, %23 : vector<16x128xf32>
    %25 = arith.mulf %24, %4 : vector<16x128xf32>
    %26 = arith.mulf %25, %25 : vector<16x128xf32>
    %cst_6 = arith.constant dense<0.000000e+00> : vector<16xf32>
    %27 = vector.multi_reduction <add>, %26, %cst_6 [1] : vector<16x128xf32> to vector<16xf32>
    %28 = vector.shape_cast %27 : vector<16xf32> to vector<16x1xf32>
    %cst_7 = arith.constant 3.125000e-02 : f32
    %29 = vector.broadcast %cst_7 : f32 to vector<16x1xf32>
    %30 = arith.mulf %28, %29 : vector<16x1xf32>
    %cst_8 = arith.constant 9.99999996E-13 : f32
    %31 = vector.broadcast %cst_8 : f32 to vector<16x1xf32>
    %32 = arith.addf %30, %31 : vector<16x1xf32>
    %33 = math.rsqrt %32 : vector<16x1xf32>
    %34 = vector.broadcast %33 : vector<16x1xf32> to vector<16x128xf32>
    %35 = arith.mulf %25, %34 : vector<16x128xf32>
    %36 = vector.broadcast %12 : vector<1x128xf32> to vector<16x128xf32>
    %37 = arith.mulf %35, %36 : vector<16x128xf32>
    %38 = vector.broadcast %13 : vector<1x128xf32> to vector<16x128xf32>
    %39 = arith.addf %37, %38 : vector<16x128xf32>
    %c0_9 = arith.constant 0 : index
    %c0_10 = arith.constant 0 : index
    %c0_11 = arith.constant 0 : index
    %40 = vector.load %arg5[%c0_9, %c0_10, %c0_11] : memref<1x128x768xf32, #tpu.memory_space<vmem>>, vector<1x128x384xf32>
    %41 = vector.shape_cast %40 : vector<1x128x384xf32> to vector<128x384xf32>
    %cst_12 = arith.constant dense<0.000000e+00> : vector<16x384xf32>
    %42 = tpu.matmul %39, %41, %cst_12 {dimension_numbers = #tpu.dot_dimension_numbers<[1], [0], [0], [1], [0, 0, 1, 1], [], []>} : vector<16x128xf32>, vector<128x384xf32>, vector<16x384xf32> -> vector<16x384xf32>
    %43 = vector.broadcast %11 : vector<1x384xf32> to vector<16x384xf32>
    %44 = arith.addf %42, %43 : vector<16x384xf32>
    %c0_13 = arith.constant 0 : index
    %c0_14 = arith.constant 0 : index
    %45 = vector.load %arg4[%c0_13, %c0_14] : memref<16x16xf32, #tpu.memory_space<vmem>>, vector<16x16xf32>
    %46 = vector.extract_strided_slice %44 {offsets = [0, 0], sizes = [16, 16], strides = [1, 1]} : vector<16x384xf32> to vector<16x16xf32>
    %47 = vector.extract_strided_slice %44 {offsets = [0, 128], sizes = [16, 16], strides = [1, 1]} : vector<16x384xf32> to vector<16x16xf32>
    %48 = vector.extract_strided_slice %44 {offsets = [0, 256], sizes = [16, 16], strides = [1, 1]} : vector<16x384xf32> to vector<16x16xf32>
    %cst_15 = arith.constant dense<0.000000e+00> : vector<16x16xf32>
    %49 = tpu.matmul %46, %47, %cst_15 {dimension_numbers = #tpu.dot_dimension_numbers<[1], [1], [0], [0], [0, 0, 1, 0], [], []>} : vector<16x16xf32>, vector<16x16xf32>, vector<16x16xf32> -> vector<16x16xf32>
    %cst_16 = arith.constant 2.500000e-01 : f32
    %50 = vector.broadcast %cst_16 : f32 to vector<16x16xf32>
    %51 = arith.mulf %49, %50 : vector<16x16xf32>
    %52 = arith.addf %51, %45 : vector<16x16xf32>
    %cst_17 = arith.constant dense<0xFF800000> : vector<16xf32>
    %53 = vector.multi_reduction <maximumf>, %52, %cst_17 [1] : vector<16x16xf32> to vector<16xf32>
    %54 = vector.shape_cast %53 : vector<16xf32> to vector<16x1xf32>
    %55 = vector.broadcast %54 : vector<16x1xf32> to vector<16x16xf32>
    %56 = arith.subf %52, %55 : vector<16x16xf32>
    %57 = math.exp %56 : vector<16x16xf32>
    %cst_18 = arith.constant dense<0.000000e+00> : vector<16xf32>
    %58 = vector.multi_reduction <add>, %57, %cst_18 [1] : vector<16x16xf32> to vector<16xf32>
    %59 = vector.shape_cast %58 : vector<16xf32> to vector<16x1xf32>
    %60 = tpu.reciprocal %59 {approx = true} : vector<16x1xf32> -> vector<16x1xf32>
    %61 = vector.broadcast %60 : vector<16x1xf32> to vector<16x16xf32>
    %62 = arith.mulf %57, %61 : vector<16x16xf32>
    %cst_19 = arith.constant dense<0.000000e+00> : vector<16x16xf32>
    %63 = tpu.matmul %62, %48, %cst_19 {dimension_numbers = #tpu.dot_dimension_numbers<[1], [0], [0], [1], [0, 0, 1, 1], [], []>} : vector<16x16xf32>, vector<16x16xf32>, vector<16x16xf32> -> vector<16x16xf32>
    %c0_20 = arith.constant 0 : index
    %c0_21 = arith.constant 0 : index
    %c640 = arith.constant 640 : index
    %64 = vector.load %arg5[%c0_20, %c0_21, %c640] : memref<1x128x768xf32, #tpu.memory_space<vmem>>, vector<1x16x128xf32>
    %65 = vector.shape_cast %64 : vector<1x16x128xf32> to vector<16x128xf32>
    %cst_22 = arith.constant dense<0.000000e+00> : vector<16x128xf32>
    %66 = tpu.matmul %63, %65, %cst_22 {dimension_numbers = #tpu.dot_dimension_numbers<[1], [0], [0], [1], [0, 0, 1, 1], [], []>} : vector<16x16xf32>, vector<16x128xf32>, vector<16x128xf32> -> vector<16x128xf32>
    %67 = vector.broadcast %14 : vector<1x128xf32> to vector<16x128xf32>
    %68 = arith.addf %67, %66 : vector<16x128xf32>
    %69 = vector.extract_strided_slice %44 {offsets = [0, 16], sizes = [16, 16], strides = [1, 1]} : vector<16x384xf32> to vector<16x16xf32>
    %70 = vector.extract_strided_slice %44 {offsets = [0, 144], sizes = [16, 16], strides = [1, 1]} : vector<16x384xf32> to vector<16x16xf32>
    %71 = vector.extract_strided_slice %44 {offsets = [0, 272], sizes = [16, 16], strides = [1, 1]} : vector<16x384xf32> to vector<16x16xf32>
    %cst_23 = arith.constant dense<0.000000e+00> : vector<16x16xf32>
    %72 = tpu.matmul %69, %70, %cst_23 {dimension_numbers = #tpu.dot_dimension_numbers<[1], [1], [0], [0], [0, 0, 1, 0], [], []>} : vector<16x16xf32>, vector<16x16xf32>, vector<16x16xf32> -> vector<16x16xf32>
    %cst_24 = arith.constant 2.500000e-01 : f32
    %73 = vector.broadcast %cst_24 : f32 to vector<16x16xf32>
    %74 = arith.mulf %72, %73 : vector<16x16xf32>
    %75 = arith.addf %74, %45 : vector<16x16xf32>
    %cst_25 = arith.constant dense<0xFF800000> : vector<16xf32>
    %76 = vector.multi_reduction <maximumf>, %75, %cst_25 [1] : vector<16x16xf32> to vector<16xf32>
    %77 = vector.shape_cast %76 : vector<16xf32> to vector<16x1xf32>
    %78 = vector.broadcast %77 : vector<16x1xf32> to vector<16x16xf32>
    %79 = arith.subf %75, %78 : vector<16x16xf32>
    %80 = math.exp %79 : vector<16x16xf32>
    %cst_26 = arith.constant dense<0.000000e+00> : vector<16xf32>
    %81 = vector.multi_reduction <add>, %80, %cst_26 [1] : vector<16x16xf32> to vector<16xf32>
    %82 = vector.shape_cast %81 : vector<16xf32> to vector<16x1xf32>
    %83 = tpu.reciprocal %82 {approx = true} : vector<16x1xf32> -> vector<16x1xf32>
    %84 = vector.broadcast %83 : vector<16x1xf32> to vector<16x16xf32>
    %85 = arith.mulf %80, %84 : vector<16x16xf32>
    %cst_27 = arith.constant dense<0.000000e+00> : vector<16x16xf32>
    %86 = tpu.matmul %85, %71, %cst_27 {dimension_numbers = #tpu.dot_dimension_numbers<[1], [0], [0], [1], [0, 0, 1, 1], [], []>} : vector<16x16xf32>, vector<16x16xf32>, vector<16x16xf32> -> vector<16x16xf32>
    %c0_28 = arith.constant 0 : index
    %c16 = arith.constant 16 : index
    %c640_29 = arith.constant 640 : index
    %87 = vector.load %arg5[%c0_28, %c16, %c640_29] : memref<1x128x768xf32, #tpu.memory_space<vmem>>, vector<1x16x128xf32>
    %88 = vector.shape_cast %87 : vector<1x16x128xf32> to vector<16x128xf32>
    %cst_30 = arith.constant dense<0.000000e+00> : vector<16x128xf32>
    %89 = tpu.matmul %86, %88, %cst_30 {dimension_numbers = #tpu.dot_dimension_numbers<[1], [0], [0], [1], [0, 0, 1, 1], [], []>} : vector<16x16xf32>, vector<16x128xf32>, vector<16x128xf32> -> vector<16x128xf32>
    %90 = arith.addf %68, %89 : vector<16x128xf32>
    %91 = arith.addf %8, %90 : vector<16x128xf32>
    %cst_31 = arith.constant dense<0.000000e+00> : vector<16xf32>
    %92 = vector.multi_reduction <add>, %91, %cst_31 [1] : vector<16x128xf32> to vector<16xf32>
    %93 = vector.shape_cast %92 : vector<16xf32> to vector<16x1xf32>
    %cst_32 = arith.constant 3.125000e-02 : f32
    %94 = vector.broadcast %cst_32 : f32 to vector<16x1xf32>
    %95 = arith.mulf %93, %94 : vector<16x1xf32>
    %96 = vector.broadcast %95 : vector<16x1xf32> to vector<16x128xf32>
    %97 = arith.subf %91, %96 : vector<16x128xf32>
    %98 = arith.mulf %97, %4 : vector<16x128xf32>
    %99 = arith.mulf %98, %98 : vector<16x128xf32>
    %cst_33 = arith.constant dense<0.000000e+00> : vector<16xf32>
    %100 = vector.multi_reduction <add>, %99, %cst_33 [1] : vector<16x128xf32> to vector<16xf32>
    %101 = vector.shape_cast %100 : vector<16xf32> to vector<16x1xf32>
    %cst_34 = arith.constant 3.125000e-02 : f32
    %102 = vector.broadcast %cst_34 : f32 to vector<16x1xf32>
    %103 = arith.mulf %101, %102 : vector<16x1xf32>
    %cst_35 = arith.constant 9.99999996E-13 : f32
    %104 = vector.broadcast %cst_35 : f32 to vector<16x1xf32>
    %105 = arith.addf %103, %104 : vector<16x1xf32>
    %106 = math.rsqrt %105 : vector<16x1xf32>
    %107 = vector.broadcast %106 : vector<16x1xf32> to vector<16x128xf32>
    %108 = arith.mulf %98, %107 : vector<16x128xf32>
    %109 = vector.broadcast %15 : vector<1x128xf32> to vector<16x128xf32>
    %110 = arith.mulf %108, %109 : vector<16x128xf32>
    %111 = vector.broadcast %16 : vector<1x128xf32> to vector<16x128xf32>
    %112 = arith.addf %110, %111 : vector<16x128xf32>
    %c0_36 = arith.constant 0 : index
    %c0_37 = arith.constant 0 : index
    %c384 = arith.constant 384 : index
    %113 = vector.load %arg5[%c0_36, %c0_37, %c384] : memref<1x128x768xf32, #tpu.memory_space<vmem>>, vector<1x128x128xf32>
    %114 = vector.shape_cast %113 : vector<1x128x128xf32> to vector<128x128xf32>
    %cst_38 = arith.constant dense<0.000000e+00> : vector<16x128xf32>
    %115 = tpu.matmul %112, %114, %cst_38 {dimension_numbers = #tpu.dot_dimension_numbers<[1], [0], [0], [1], [0, 0, 1, 1], [], []>} : vector<16x128xf32>, vector<128x128xf32>, vector<16x128xf32> -> vector<16x128xf32>
    %116 = vector.broadcast %17 : vector<1x128xf32> to vector<16x128xf32>
    %117 = arith.addf %115, %116 : vector<16x128xf32>
    %118 = arith.mulf %117, %117 : vector<16x128xf32>
    %119 = arith.mulf %117, %118 : vector<16x128xf32>
    %cst_39 = arith.constant 4.471500e-02 : f32
    %120 = vector.broadcast %cst_39 : f32 to vector<16x128xf32>
    %121 = arith.mulf %120, %119 : vector<16x128xf32>
    %122 = arith.addf %117, %121 : vector<16x128xf32>
    %cst_40 = arith.constant 0.797884583 : f32
    %123 = vector.broadcast %cst_40 : f32 to vector<16x128xf32>
    %124 = arith.mulf %123, %122 : vector<16x128xf32>
    %125 = math.tanh %124 : vector<16x128xf32>
    %cst_41 = arith.constant 1.000000e+00 : f32
    %126 = vector.broadcast %cst_41 : f32 to vector<16x128xf32>
    %127 = arith.addf %126, %125 : vector<16x128xf32>
    %cst_42 = arith.constant 5.000000e-01 : f32
    %128 = vector.broadcast %cst_42 : f32 to vector<16x128xf32>
    %129 = arith.mulf %128, %127 : vector<16x128xf32>
    %130 = arith.mulf %117, %129 : vector<16x128xf32>
    %c0_43 = arith.constant 0 : index
    %c0_44 = arith.constant 0 : index
    %c512 = arith.constant 512 : index
    %131 = vector.load %arg5[%c0_43, %c0_44, %c512] : memref<1x128x768xf32, #tpu.memory_space<vmem>>, vector<1x128x128xf32>
    %132 = vector.shape_cast %131 : vector<1x128x128xf32> to vector<128x128xf32>
    %cst_45 = arith.constant dense<0.000000e+00> : vector<16x128xf32>
    %133 = tpu.matmul %130, %132, %cst_45 {dimension_numbers = #tpu.dot_dimension_numbers<[1], [0], [0], [1], [0, 0, 1, 1], [], []>} : vector<16x128xf32>, vector<128x128xf32>, vector<16x128xf32> -> vector<16x128xf32>
    %134 = vector.broadcast %18 : vector<1x128xf32> to vector<16x128xf32>
    %135 = arith.addf %133, %134 : vector<16x128xf32>
    %136 = arith.addf %91, %135 : vector<16x128xf32>
    %c0_46 = arith.constant 0 : index
    %c0_47 = arith.constant 0 : index
    %137 = vector.load %arg10[%c0_46, %c0_47] : memref<16x128xf32, #tpu.memory_space<vmem>>, vector<16x128xf32>
    tpu.vector_store %arg10[%c0_46, %c0_47], %136 {strides = array<i32>} : memref<16x128xf32, #tpu.memory_space<vmem>>, vector<16x128xf32>,
    %c1_i32 = arith.constant 1 : i32
    %138 = arith.cmpi eq, %arg0, %c1_i32 : i32
    %139 = arith.extui %138 : i1 to i32
    %c0_i32_48 = arith.constant 0 : i32
    %140 = arith.cmpi ne, %139, %c0_i32_48 : i32
    scf.if %140 {
      %c0_49 = arith.constant 0 : index
      %c0_50 = arith.constant 0 : index
      %141 = vector.load %arg7[%c0_49, %c0_50] : memref<8x128xf32, #tpu.memory_space<vmem>>, vector<8x128xf32>
      %142 = vector.extract_strided_slice %141 {offsets = [0, 0], sizes = [1, 128], strides = [1, 1]} : vector<8x128xf32> to vector<1x128xf32>
      %143 = vector.extract_strided_slice %141 {offsets = [1, 0], sizes = [1, 128], strides = [1, 1]} : vector<8x128xf32> to vector<1x128xf32>
      %cst_51 = arith.constant dense<0.000000e+00> : vector<16xf32>
      %144 = vector.multi_reduction <add>, %136, %cst_51 [1] : vector<16x128xf32> to vector<16xf32>
      %145 = vector.shape_cast %144 : vector<16xf32> to vector<16x1xf32>
      %cst_52 = arith.constant 3.125000e-02 : f32
      %146 = vector.broadcast %cst_52 : f32 to vector<16x1xf32>
      %147 = arith.mulf %145, %146 : vector<16x1xf32>
      %148 = vector.broadcast %147 : vector<16x1xf32> to vector<16x128xf32>
      %149 = arith.subf %136, %148 : vector<16x128xf32>
      %150 = arith.mulf %149, %4 : vector<16x128xf32>
      %151 = arith.mulf %150, %150 : vector<16x128xf32>
      %cst_53 = arith.constant dense<0.000000e+00> : vector<16xf32>
      %152 = vector.multi_reduction <add>, %151, %cst_53 [1] : vector<16x128xf32> to vector<16xf32>
      %153 = vector.shape_cast %152 : vector<16xf32> to vector<16x1xf32>
      %cst_54 = arith.constant 3.125000e-02 : f32
      %154 = vector.broadcast %cst_54 : f32 to vector<16x1xf32>
      %155 = arith.mulf %153, %154 : vector<16x1xf32>
      %cst_55 = arith.constant 9.99999996E-13 : f32
      %156 = vector.broadcast %cst_55 : f32 to vector<16x1xf32>
      %157 = arith.addf %155, %156 : vector<16x1xf32>
      %158 = math.rsqrt %157 : vector<16x1xf32>
      %159 = vector.broadcast %158 : vector<16x1xf32> to vector<16x128xf32>
      %160 = arith.mulf %150, %159 : vector<16x128xf32>
      %161 = vector.broadcast %142 : vector<1x128xf32> to vector<16x128xf32>
      %162 = arith.mulf %160, %161 : vector<16x128xf32>
      %163 = vector.broadcast %143 : vector<1x128xf32> to vector<16x128xf32>
      %164 = arith.addf %162, %163 : vector<16x128xf32>
      %c0_56 = arith.constant 0 : index
      %c0_57 = arith.constant 0 : index
      %165 = vector.load %arg8[%c0_56, %c0_57] : memref<128x128xf32, #tpu.memory_space<vmem>>, vector<128x128xf32>
      %cst_58 = arith.constant dense<0.000000e+00> : vector<16x128xf32>
      %166 = tpu.matmul %164, %165, %cst_58 {dimension_numbers = #tpu.dot_dimension_numbers<[1], [0], [0], [1], [0, 0, 1, 1], [], []>} : vector<16x128xf32>, vector<128x128xf32>, vector<16x128xf32> -> vector<16x128xf32>
      %167 = vector.extract_strided_slice %141 {offsets = [2, 0], sizes = [1, 128], strides = [1, 1]} : vector<8x128xf32> to vector<1x128xf32>
      %168 = vector.broadcast %167 : vector<1x128xf32> to vector<16x128xf32>
      %169 = arith.addf %166, %168 : vector<16x128xf32>
      %c0_59 = arith.constant 0 : index
      %c0_60 = arith.constant 0 : index
      %170 = vector.load %arg9[%c0_59, %c0_60] : memref<16x128xf32, #tpu.memory_space<vmem>>, vector<16x128xf32>
      tpu.vector_store %arg9[%c0_59, %c0_60], %169 {strides = array<i32>} : memref<16x128xf32, #tpu.memory_space<vmem>>, vector<16x128xf32>,
    } else {
    }
    return
  }
  func.func @transform_0(%arg0: i32) -> (i32, i32) {
    %c0_i32 = arith.constant 0 : i32
    %c0_i32_0 = arith.constant 0 : i32
    %c0_i32_1 = arith.constant 0 : i32
    return %c0_i32, %c0_i32_0 : i32, i32
  }
  func.func @transform_1(%arg0: i32) -> (i32, i32) {
    %c0_i32 = arith.constant 0 : i32
    %c0_i32_0 = arith.constant 0 : i32
    %c0_i32_1 = arith.constant 0 : i32
    return %c0_i32, %c0_i32_0 : i32, i32
  }
  func.func @transform_2(%arg0: i32) -> (i32, i32) {
    %c0_i32 = arith.constant 0 : i32
    %c0_i32_0 = arith.constant 0 : i32
    %c0_i32_1 = arith.constant 0 : i32
    return %c0_i32, %c0_i32_0 : i32, i32
  }
  func.func @transform_3(%arg0: i32) -> (i32, i32) {
    %c0_i32 = arith.constant 0 : i32
    %c0_i32_0 = arith.constant 0 : i32
    %c0_i32_1 = arith.constant 0 : i32
    return %c0_i32, %c0_i32_0 : i32, i32
  }
  func.func @transform_4(%arg0: i32) -> (i32, i32, i32) {
    %c0_i32 = arith.constant 0 : i32
    %c0_i32_0 = arith.constant 0 : i32
    %c0_i32_1 = arith.constant 0 : i32
    return %arg0, %c0_i32, %c0_i32_0 : i32, i32, i32
  }
  func.func @transform_5(%arg0: i32) -> (i32, i32, i32) {
    %c0_i32 = arith.constant 0 : i32
    %c0_i32_0 = arith.constant 0 : i32
    %c0_i32_1 = arith.constant 0 : i32
    return %arg0, %c0_i32, %c0_i32_0 : i32, i32, i32
  }
  func.func @transform_6(%arg0: i32) -> (i32, i32) {
    %c0_i32 = arith.constant 0 : i32
    %c0_i32_0 = arith.constant 0 : i32
    %c0_i32_1 = arith.constant 0 : i32
    return %c0_i32, %c0_i32_0 : i32, i32
  }
  func.func @transform_7(%arg0: i32) -> (i32, i32) {
    %c0_i32 = arith.constant 0 : i32
    %c0_i32_0 = arith.constant 0 : i32
    %c0_i32_1 = arith.constant 0 : i32
    return %c0_i32, %c0_i32_0 : i32, i32
  }
  func.func @transform_8(%arg0: i32) -> (i32, i32) {
    %c0_i32 = arith.constant 0 : i32
    %c0_i32_0 = arith.constant 0 : i32
    %c0_i32_1 = arith.constant 0 : i32
    return %c0_i32, %c0_i32_0 : i32, i32
  }
}

</mosaic_0001>

<bundles_post_ra>
// kernel: custom_vit_forward.1
= control target key start
LH: loop header
LB: loop body
LE: loop exit
PB: predicated region body
PF: predicated region fallthrough
CT: control target
= control target key end

     0   :  { %13 = vsyncpa [#allocation4], 0  ;;  %s1851_s0 = inlined_call_operand.vmem [shape: f32[16,192], index: 0, kind: input, shape index: {}]   ;;  %s1852_s1 = inlined_call_operand.vmem [shape: f32[192,128], index: 1, kind: input, shape index: {}]   ;;  %s1853_s2 = inlined_call_operand.vmem [shape: f32[16,128], index: 2, kind: input, shape index: {}]   ;;  %s1854_s3 = inlined_call_operand.vmem [shape: f32[16,16], index: 3, kind: input, shape index: {}]   ;;  %s1855_s4 = inlined_call_operand.hbm [shape: f32[2,128,768], index: 4, kind: input, shape index: {}]   ;;  %s1856_s5 = inlined_call_operand.vmem [shape: f32[2,8,384], index: 5, kind: input, shape index: {}]   ;;  %s1857_s6 = inlined_call_operand.vmem [shape: f32[8,128], index: 6, kind: input, shape index: {}]   ;;  %s1858_s7 = inlined_call_operand.vmem [shape: f32[128,128], index: 7, kind: input, shape index: {}]   ;;  %s1859_s8 = inlined_call_operand.vmem [shape: f32[16,128], index: 8, kind: output, shape index: {}]  }
   0x1   :  { %15 = vsyncpa [#allocation4 + $0x1], 0  ;;  %s1420_s27 = smov 0   ;;  %s1422_s28 = smov 0  }
   0x2   :  { %s1424_s29 = smov 0   ;;  %s1426_s30 = smov 0  }
   0x3 LB: > { %s1439_s9 = sadd.s32 4294967295, %s1369_s30   ;;  %s1442_s10 = sadd.s32 1, %s1369_s30   ;;  %s1369_s30 = sphi %s1426_s30, %s1865_s30   ;;  %s1365_s29 = sphi %s1424_s29, %s1864_s29   ;;  %s1361_s28 = sphi %s1422_s28, %s1863_s28   ;;  %s1357_s27 = sphi %s1420_s27, %s1862_s27  }
   0x4   : > { %s109_s11 = ssub.s32 %s1369_s30, %s1442_s10  ;;  %s112_s12 = sadd.s32 1, %s1365_s29 }
   0x5   : > { %p110_p0 = scmp.eq.s32.totalorder %s109_s11, 0  ;;  %p119_p1 = scmp.ne.s32.totalorder %s1365_s29, %s1361_s28 }
   0x6   : > { %p120_p2 = scmp.eq.s32.totalorder %s1369_s30, 0  ;;  %p125_p3 = scmp.ne.s32.totalorder %s1361_s28, %s1357_s27 }
   0x7   : > { %s1452_s13 = scalar_select %p110_p0, %s1365_s29, %s112_s12  }
   0x8   : > { %p121_p4 = por %p120_p2, %p119_p1  ;;  %p126_p5 = scmp.eq.s32.totalorder %s1439_s9, 0 }
   0x9   : > { %p1231_p6 = scmp.lt.s32.totalorder %s1369_s30, 2  ;;  %s256_s15 = sand.u32 1, %s1365_s29  }
   0xa   : > { %p1456_p7 = por %p126_p5, %p125_p3  ;;  %s1221_s16 = smul.u32 768, %s256_s15 }
   0xb   : > { %s1222_s17 = smul.u32 768, %s1369_s30  ;;  %p1462_p8 = pnand %p1231_p6, %p121_p4 }
   0xc   : > { %s260_s22 = scalar_lea.vmem [#allocation3], %s1221_s16  ;;  %p1164_p9 = scmp.ge.s32.totalorder %s1369_s30, 1 }
   0xd   : > { %s265_s21 = scalar_lea.hbm %s1855_s4, %s1222_s17  ;;  %s268_s23 = sshll.u32 %s260_s22, 4  ;;  %s269_s23 = int_to_ptr.vmem [resolvable:$true] %s268_s23 }
   0xe   : > { %s266_s24 = sshll.u32 %s265_s21, 4  ;;  %s257_s25 = scalar_lea.sflag [#allocation4], %s256_s15  ;;  %s267_s24 = int_to_ptr.hbm [resolvable:$true] %s266_s24 }
   0xf   : > { %s1305_s26 = sshra.s32 %s267_s24, 4  ;;  %p1309_p11 = pneg %p1462_p8  ;;  %s1306_s26 = int_to_ptr.hbm [resolvable:$true] %s1305_s26 }
  0x10   : > { %s1307_s27 = scalar_lea.hbm %s1306_s26, 768  ;;  %s1312_s19 = scalar_lea.hbm %s1855_s4, 1536 }
  0x11   : > { %p1308_p10 = scmp.ne.s32.totalorder %s1306_s26, %s1307_s27  ;;  %p1313_p0 = scmp.lt.s32.totalorder %s1306_s26, %s1855_s4 }
  0x12   : > { %p1314_p1 = scmp.lt.s32.totalorder %s1312_s19, %s1307_s27 }
  0x13   : > { %p1310_p12 = pnand %p1309_p11, %p1308_p10 }
  0x14   : > { %p1315_p2 = por %p1314_p1, %p1313_p0 }
  0x15   : > { %p1311_p13 = pneg %p1310_p12 }
  0x17   : > { %p1316_p3 = pnand %p1315_p2, %p1311_p13 }
  0x19   : > { %1319 = shalt.err (!%p1316_p3)
}
  0x1a   : > { %s1371_s15 = smov 768   ;;  %s1372_s20 = smov 48  }
  0x1b   : > { %1230 = dma.hbm_to_vmem [thread:$0]  (!%p1462_p8), %s267_s24, 12288, %s269_s23, %s257_s25, %s1371_s15, %s1371_s15, %s1372_s20  }
  0x1c   : > { %p284_p4 = scmp.lt.s32.totalorder %s1369_s30, 3 }
  0x1e   : > { %p285_p5 = pnand %p1164_p9, %p284_p4 }
  0x1f   : > { %s290_s21 = sand.u32 (!%p285_p5), 1, %s1361_s28  }
  0x20   : > { %288 = sbr.rel (%p285_p5) target bundleno = 2343 (0x927), region = 52  ;;  %s291_s26 = scalar_lea.sflag (!%p285_p5), [#allocation4], %s290_s21 }
  0x21   : > { %s1223_s22 = smul.u32 (!%p285_p5), 768, %s290_s21 }
  0x23   : > { %s1484_s27 = scalar_lea.vmem (!%p285_p5), [#allocation3], %s1223_s22 }
  0x25   : > { %1352 = dma.done.wait (%p1456_p7), %s291_s26, 12288  }
  0x26   : > { %1354 = vsyncadd (%p1456_p7), %s291_s26, 4294955008  ;;  %p328_p6 = scmp.lt.s32.totalorder %s1439_s9, 1  ;;  %v333_v0 = vlaneseq  ;;  %v1373_v2 = vmov 0.0   ;;  %p1167_p8 = scmp.ne.s32.totalorder %s1439_s9, 0 }
  0x28   : > { %s329_s18 = scalar_select %p328_p6, %s1439_s9, 1  ;;  %v334_v1 = vand.u32 127, %v333_v0 }
  0x29   : > { %341 = sbr.rel (%p1167_p8) target bundleno = 215 (0xd7), region = 60 }
  0x2a   : > { %s1224_s30 = smul.u32 24, %s329_s18  ;;  %vm335_vm0 = vcmp.lt.s32.totalorder %v334_v1, 32 }
  0x2b   : > { %v1492_v3 = vsel %vm335_vm0, 1.0, %v1373_v2 }
  0x2c   : > { %s1497_s25 = scalar_lea.vmem %s1856_s5, %s1224_s30 }
  0x2e   : > { %v361_v4 = vld [vmem:[%s1852_s1 + $0x78] sm:$0xff]  ;;  %v360_v5 = vld [vmem:[%s1852_s1 + $0x70] sm:$0xff]  ;;  %v359_v6 = vld [vmem:[%s1852_s1 + $0x68] sm:$0xff]  ;;  %vm372_vm1 = vcmask 523264  }
  0x2f   : > { %379 = vmatpush.msra.mxu0 %v361_v4  ;;  %1189 = vmatpush.msra.mxu2 %v361_v4  ;;  %v369_v7 = vld [vmem:[%s1852_s1 + $0xb8] sm:$0xff]  ;;  %v368_v8 = vld [vmem:[%s1852_s1 + $0xb0] sm:$0xff]  ;;  %v358_v9 = vld [vmem:[%s1852_s1 + $0x60] sm:$0xff] }
  0x30   : > { %410 = vmatpush.msra.mxu1 %v369_v7  ;;  %v367_v10 = vld [vmem:[%s1852_s1 + $0xa8] sm:$0xff]  ;;  %v357_v11 = vld [vmem:[%s1852_s1 + $0x58] sm:$0xff]  ;;  %v366_v12 = vld [vmem:[%s1852_s1 + $0xa0] sm:$0xff] }
  0x31   : > { %380 = vmatpush.msra.mxu0 %v360_v5  ;;  %1190 = vmatpush.msra.mxu2 %v360_v5  ;;  %v356_v13 = vld [vmem:[%s1852_s1 + $0x50] sm:$0xff]  ;;  %v365_v14 = vld [vmem:[%s1852_s1 + $0x98] sm:$0xff]  ;;  %v355_v15 = vld [vmem:[%s1852_s1 + $0x48] sm:$0xff] }
  0x32   : > { %411 = vmatpush.msra.mxu1 %v368_v8  ;;  %v364_v16 = vld [vmem:[%s1852_s1 + $0x90] sm:$0xff]  ;;  %v354_v17 = vld [vmem:[%s1852_s1 + $0x40] sm:$0xff]  ;;  %v363_v18 = vld [vmem:[%s1852_s1 + $0x88] sm:$0xff] }
  0x33   : > { %381 = vmatpush.msra.mxu0 %v359_v6  ;;  %1191 = vmatpush.msra.mxu2 %v359_v6  ;;  %v353_v19 = vld [vmem:[%s1852_s1 + $0x38] sm:$0xff]  ;;  %v362_v20 = vld [vmem:[%s1852_s1 + $0x80] sm:$0xff]  ;;  %v352_v21 = vld [vmem:[%s1852_s1 + $0x30] sm:$0xff] }
  0x34   : > { %412 = vmatpush.msra.mxu1 %v367_v10  ;;  %v343_v22 = vld [vmem:[%s1851_s0 + $0x8] sm:$0xff]  ;;  %v350_v24 = vld [vmem:[%s1852_s1 + $0x20] sm:$0xff]  ;;  %v349_v25 = vld [vmem:[%s1852_s1 + $0x18] sm:$0xff] }
  0x35   : > { %382 = vmatpush.msra.mxu0 %v358_v9  ;;  %1192 = vmatpush.msra.mxu2 %v358_v9  ;;  %v351_v23 = vld [vmem:[%s1852_s1 + $0x28] sm:$0xff]  ;;  %v348_v26 = vld [vmem:[%s1852_s1 + $0x10] sm:$0xff]  ;;  %v345_v27 = vld [vmem:[%s1851_s0 + $0x18] sm:$0xff] }
  0x36   : > { %413 = vmatpush.msra.mxu1 %v366_v12  ;;  %v347_v28 = vld [vmem:[%s1852_s1 + $0x8] sm:$0xff]  ;;  %v346_v29 = vld [vmem:[%s1852_s1] sm:$0xff]  ;;  %v344_v31 = vld [vmem:[%s1851_s0 + $0x10] sm:$0xff] }
  0x37   : > { %383 = vmatpush.msra.mxu0 %v357_v11  ;;  %1193 = vmatpush.msra.mxu2 %v357_v11  ;;  %v342_v30 = vld [vmem:[%s1851_s0] sm:$0xff]  ;;  %v371_v37 = vld [vmem:[%s1853_s2 + $0x8] sm:$0xff] }
  0x38   : > { %414 = vmatpush.msra.mxu1 %v365_v14  ;;  %v370_v33 = vld [vmem:[%s1853_s2] sm:$0xff] }
  0x39   : > { %384 = vmatpush.msra.mxu0 %v356_v13  ;;  %1194 = vmatpush.msra.mxu2 %v356_v13 }
  0x3a   : > { %415 = vmatpush.msra.mxu1 %v364_v16 }
  0x3b   : > { %385 = vmatpush.msra.mxu0 %v355_v15  ;;  %1195 = vmatpush.msra.mxu2 %v355_v15 }
  0x3c   : > { %416 = vmatpush.msra.mxu1 %v363_v18 }
  0x3d   : > { %386 = vmatpush.msra.mxu0 %v354_v17  ;;  %1196 = vmatpush.msra.mxu2 %v354_v17 }
  0x3e   : > { %417 = vmatpush.msra.mxu1 %v362_v20 }
  0x3f   : > { %387 = vmatpush.msra.mxu0 %v353_v19  ;;  %1197 = vmatpush.msra.mxu2 %v353_v19 }
  0x40   : > { %1168 = vmatmul.msk.f32.vlgmr.msra.gmra.mxu1 %vm372_vm1, %v343_v22 }
  0x41   : > { %388 = vmatpush.msra.mxu0 %v352_v21  ;;  %1198 = vmatpush.msra.mxu2 %v352_v21 }
  0x43   : > { %389 = vmatpush.msra.mxu0 %v351_v23  ;;  %1199 = vmatpush.msra.mxu2 %v351_v23 }
  0x45   : > { %390 = vmatpush.msra.mxu0 %v350_v24  ;;  %1200 = vmatpush.msra.mxu2 %v350_v24 }
  0x47   : > { %391 = vmatpush.msra.mxu0 %v349_v25  ;;  %1201 = vmatpush.msra.mxu2 %v349_v25 }
  0x48   : > { %1169 = vmatmul.msk.f32.gmra.mxu1 %vm372_vm1, %v345_v27 }
  0x49   : > { %392 = vmatpush.msra.mxu0 %v348_v26  ;;  %1202 = vmatpush.msra.mxu2 %v348_v26 }
  0x4b   : > { %393 = vmatpush.msra.mxu0 %v347_v28  ;;  %1203 = vmatpush.msra.mxu2 %v347_v28 }
  0x4d   : > { %394 = vmatpush.msra.mxu0 %v346_v29  ;;  %1204 = vmatpush.msra.mxu2 %v346_v29 }
  0x4e   : > { %395 = vmatmul.f32.vlgmr.msra.gmra.mxu0 %v342_v30  ;;  %398 = vmatmul.f32.vlgmr.msra.gmra.mxu2 %v344_v31 }
  0xbd   : > { %v419_v32 = vpop.f32.mrf.mxu1 }
  0xc5   : > { %v422_v39 = vpop.f32.mrf.mxu1 }
  0xcb   : > { %v396_v34 = vpop.f32.mrf.mxu0 }
  0xcc   : > { %v397_v35 = vadd.f32 %v396_v34, %v370_v33 }
  0xce   : > { %v420_v36 = vadd.f32 %v419_v32, %v397_v35 }
  0xd0   : > { %425 = vst [vmem:[#allocation2] sm:$0xff] %v420_v36 }
  0xd1   : > { %v399_v38 = vpop.f32.mrf.mxu2 }
  0xd2   : > { %v400_v40 = vadd.f32 %v399_v38, %v371_v37 }
  0xd4   : > { %v423_v41 = vadd.f32 %v422_v39, %v400_v40 }
  0xd6   : > { %426 = vst [vmem:[#allocation2 + $0x8] sm:$0xff] %v423_v41 }
  0xd7 PF: > { %v1592_v42 = vld [vmem:[#allocation2] sm:$0xff]  ;;  %v526_v45 = vld [vmem:[%s1484_s27 + $0x2d8] sm:$0xff]  ;;  %v527_v46 = vld [vmem:[%s1484_s27 + $0x2e0] sm:$0xff]  ;;  %s1374_s14 = smov 112   ;;  %vm602_vm8 = vcmask 130048   ;;  %p1186_p7 = scmp.ne.s32.totalorder %s1439_s9, 1 }
  0xd8   : > { %432 = vadd.xlane.f32.xlu0 %v1592_v42  ;;  %v525_v44 = vld [vmem:[%s1484_s27 + $0x2d0] sm:$0xff]  ;;  %554 = vmatpush.msra.mxu1 %v526_v45  ;;  %v522_v47 = vld [vmem:[%s1484_s27 + $0x2a0] sm:$0xff]  ;;  %v523_v48 = vld [vmem:[%s1484_s27 + $0x2a8] sm:$0xff] }
  0xd9   : > { %531 = vmatpush.msra.mxu0 %v525_v44  ;;  %v524_v49 = vld [vmem:[%s1484_s27 + $0x2b0] sm:$0xff]  ;;  %577 = vmatpush.msra.mxu2 %v527_v46  ;;  %v520_v61 = vld [vmem:[%s1484_s27 + $0x278] sm:$0xff]  ;;  %v521_v62 = vld [vmem:[%s1484_s27 + $0x280] sm:$0xff] }
  0xda   : > { %555 = vmatpush.msra.mxu1 %v523_v48  ;;  %v519_v60 = vld [vmem:[%s1484_s27 + $0x270] sm:$0xff]  ;;  %v516_v63 = vld [vmem:[%s1484_s27 + $0x240] sm:$0xff]  ;;  %v517_v0 = vld [vmem:[%s1484_s27 + $0x248] sm:$0xff] }
  0xdb   : > { %532 = vmatpush.msra.mxu0 %v522_v47  ;;  %578 = vmatpush.msra.mxu2 %v524_v49  ;;  %v518_v1 = vld [vmem:[%s1484_s27 + $0x250] sm:$0xff]  ;;  %v514_v4 = vld [vmem:[%s1484_s27 + $0x218] sm:$0xff]  ;;  %v515_v5 = vld [vmem:[%s1484_s27 + $0x220] sm:$0xff] }
  0xdc   : > { %556 = vmatpush.msra.mxu1 %v520_v61  ;;  %v513_v2 = vld [vmem:[%s1484_s27 + $0x210] sm:$0xff]  ;;  %v510_v6 = vld [vmem:[%s1484_s27 + $0x1e0] sm:$0xff]  ;;  %v511_v7 = vld [vmem:[%s1484_s27 + $0x1e8] sm:$0xff] }
  0xdd   : > { %v1595_v43 = vld [vmem:[#allocation2 + $0x8] sm:$0xff]  ;;  %533 = vmatpush.msra.mxu0 %v519_v60  ;;  %579 = vmatpush.msra.mxu2 %v521_v62  ;;  %v512_v8 = vld [vmem:[%s1484_s27 + $0x1f0] sm:$0xff]  ;;  %v509_v11 = vld [vmem:[%s1484_s27 + $0x1c0] sm:$0xff] }
  0xde   : > { %557 = vmatpush.msra.mxu1 %v517_v0  ;;  %v507_v9 = vld [vmem:[%s1484_s27 + $0x1b0] sm:$0xff]  ;;  %v508_v10 = vld [vmem:[%s1484_s27 + $0x1b8] sm:$0xff]  ;;  %v504_v12 = vld [vmem:[%s1484_s27 + $0x180] sm:$0xff] }
  0xdf   : > { %534 = vmatpush.msra.mxu0 %v516_v63  ;;  %580 = vmatpush.msra.mxu2 %v518_v1  ;;  %v505_v13 = vld [vmem:[%s1484_s27 + $0x188] sm:$0xff]  ;;  %v506_v14 = vld [vmem:[%s1484_s27 + $0x190] sm:$0xff]  ;;  %v502_v16 = vld [vmem:[%s1484_s27 + $0x158] sm:$0xff] }
  0xe0   : > { %434 = vadd.xlane.f32.xlu0 %v1595_v43  ;;  %558 = vmatpush.msra.mxu1 %v514_v4  ;;  %v501_v15 = vld [vmem:[%s1484_s27 + $0x150] sm:$0xff]  ;;  %v503_v17 = vld [vmem:[%s1484_s27 + $0x160] sm:$0xff]  ;;  %v499_v19 = vld [vmem:[%s1484_s27 + $0x128] sm:$0xff] }
  0xe1   : > { %535 = vmatpush.msra.mxu0 %v513_v2  ;;  %581 = vmatpush.msra.mxu2 %v515_v5  ;;  %v498_v18 = vld [vmem:[%s1484_s27 + $0x120] sm:$0xff]  ;;  %v500_v20 = vld [vmem:[%s1484_s27 + $0x130] sm:$0xff]  ;;  %v496_v22 = vld [vmem:[%s1484_s27 + $0xf8] sm:$0xff] }
  0xe2   : > { %559 = vmatpush.msra.mxu1 %v511_v7  ;;  %v495_v21 = vld [vmem:[%s1484_s27 + $0xf0] sm:$0xff]  ;;  %v497_v23 = vld [vmem:[%s1484_s27 + $0x100] sm:$0xff]  ;;  %v493_v25 = vld [vmem:[%s1484_s27 + $0xc8] sm:$0xff] }
  0xe3   : > { %536 = vmatpush.msra.mxu0 %v510_v6  ;;  %582 = vmatpush.msra.mxu2 %v512_v8  ;;  %v492_v24 = vld [vmem:[%s1484_s27 + $0xc0] sm:$0xff]  ;;  %v494_v26 = vld [vmem:[%s1484_s27 + $0xd0] sm:$0xff]  ;;  %v490_v28 = vld [vmem:[%s1484_s27 + $0x98] sm:$0xff] }
  0xe4   : > { %560 = vmatpush.msra.mxu1 %v508_v10  ;;  %v489_v27 = vld [vmem:[%s1484_s27 + $0x90] sm:$0xff]  ;;  %v491_v29 = vld [vmem:[%s1484_s27 + $0xa0] sm:$0xff]  ;;  %v487_v31 = vld [vmem:[%s1484_s27 + $0x68] sm:$0xff] }
  0xe5   : > { %537 = vmatpush.msra.mxu0 %v507_v9  ;;  %583 = vmatpush.msra.mxu2 %v509_v11  ;;  %v486_v30 = vld [vmem:[%s1484_s27 + $0x60] sm:$0xff]  ;;  %v488_v32 = vld [vmem:[%s1484_s27 + $0x70] sm:$0xff]  ;;  %v484_v34 = vld [vmem:[%s1484_s27 + $0x38] sm:$0xff] }
  0xe6   : > { %561 = vmatpush.msra.mxu1 %v505_v13  ;;  %v483_v33 = vld [vmem:[%s1484_s27 + $0x30] sm:$0xff]  ;;  %v485_v35 = vld [vmem:[%s1484_s27 + $0x40] sm:$0xff]  ;;  %v481_v37 = vld [vmem:[%s1484_s27 + $0x8] sm:$0xff] }
  0xe7   : > { %538 = vmatpush.msra.mxu0 %v504_v12  ;;  %584 = vmatpush.msra.mxu2 %v506_v14  ;;  %v480_v36 = vld [vmem:[%s1484_s27] sm:$0xff]  ;;  %v482_v38 = vld [vmem:[%s1484_s27 + $0x10] sm:$0xff]  ;;  %v430_v12 = vld [vmem:[%s1497_s25 + $0x8] sm:$0xff] }
  0xe8   : > { %562 = vmatpush.msra.mxu1 %v502_v16  ;;  %v529_v13 = vperm.slane %v430_v12, 0 }
  0xe9   : > { %539 = vmatpush.msra.mxu0 %v501_v15  ;;  %585 = vmatpush.msra.mxu2 %v503_v17 }
  0xea   : > { %563 = vmatpush.msra.mxu1 %v499_v19 }
  0xeb   : > { %540 = vmatpush.msra.mxu0 %v498_v18  ;;  %586 = vmatpush.msra.mxu2 %v500_v20 }
  0xec   : > { %564 = vmatpush.msra.mxu1 %v496_v22 }
  0xed   : > { %541 = vmatpush.msra.mxu0 %v495_v21  ;;  %587 = vmatpush.msra.mxu2 %v497_v23 }
  0xee   : > { %565 = vmatpush.msra.mxu1 %v493_v25 }
  0xef   : > { %542 = vmatpush.msra.mxu0 %v492_v24  ;;  %588 = vmatpush.msra.mxu2 %v494_v26 }
  0xf0   : > { %566 = vmatpush.msra.mxu1 %v490_v28 }
  0xf1   : > { %543 = vmatpush.msra.mxu0 %v489_v27  ;;  %589 = vmatpush.msra.mxu2 %v491_v29 }
  0xf2   : > { %567 = vmatpush.msra.mxu1 %v487_v31 }
  0xf3   : > { %544 = vmatpush.msra.mxu0 %v486_v30  ;;  %590 = vmatpush.msra.mxu2 %v488_v32  ;;  %v600_v30 = vld [vmem:[%s1854_s3] sm:$0xff] }
  0xf4   : > { %568 = vmatpush.msra.mxu1 %v484_v34 }
  0xf5   : > { %545 = vmatpush.msra.mxu0 %v483_v33  ;;  %591 = vmatpush.msra.mxu2 %v485_v35  ;;  %v601_v35 = vld [vmem:[%s1854_s3 + $0x8] sm:$0xff] }
  0xf6   : > { %569 = vmatpush.msra.mxu1 %v481_v37 }
  0xf7   : > { %546 = vmatpush.msra.mxu0 %v480_v36  ;;  %592 = vmatpush.msra.mxu2 %v482_v38 }
 0x14b   : > { %v433_v50 = vpop.xlane.xlu0 %432 }
 0x14c   : > { %v436_v51 = vmul.f32 0.03125, %v433_v50 }
 0x14e   : > { %v438_v52 = vsub.f32 %v1592_v42, %v436_v51 }
 0x150   : > { %v1606_v53 = vmul.f32 %v1492_v3, %v438_v52  ;;  %v1659_v52 = vld [vmem:[%s1497_s25] sm:$0xff] }
 0x151   : > { %v477_v62 = vperm.slane %v1659_v52, 2 }
 0x152   : > { %v442_v54 = vmul.f32 %v1606_v53, %v1606_v53 }
 0x153   : > { %v435_v55 = vpop.xlane.xlu0 %434 }
 0x154   : > { %v437_v56 = vmul.f32 0.03125, %v435_v55  ;;  %444 = vadd.xlane.f32.xlu1 %v442_v54 }
 0x156   : > { %v439_v57 = vsub.f32 %v1595_v43, %v437_v56 }
 0x158   : > { %v1612_v58 = vmul.f32 %v1492_v3, %v439_v57  ;;  %v474_v57 = vperm.slane %v1659_v52, 1 }
 0x15a   : > { %v443_v59 = vmul.f32 %v1612_v58, %v1612_v58 }
 0x15c   : > { %446 = vadd.xlane.f32.xlu1 %v443_v59 }
 0x1c7   : > { %v445_v39 = vpop.xlane.xlu1 %444 }
 0x1c8   : > { %v448_v40 = vmul.f32 0.03125, %v445_v39 }
 0x1ca   : > { %v450_v41 = vadd.f32 1e-12, %v448_v40 }
 0x1cc   : > { %1273 = vrsqrt.f32 %v450_v41  ;;  %vm458_vm3 = vweird.f32 %v450_v41 }
 0x1cf   : > { %v447_v44 = vpop.xlane.xlu1 %446 }
 0x1d0   : > { %v449_v45 = vmul.f32 0.03125, %v447_v44 }
 0x1d2   : > { %v1274_v46 = vpop.eup %1273  ;;  %v451_v47 = vadd.f32 1e-12, %v449_v45 }
 0x1d3   : > { %v453_v48 = vmul.f32 %v1274_v46, %v450_v41  ;;  %vm459_vm2 = vweird.f32 %v1274_v46 }
 0x1d4   : > { %1275 = vrsqrt.f32 %v451_v47  ;;  %vm460_vm4 = vmor %vm458_vm3, %vm459_vm2  ;;  %vm468_vm6 = vweird.f32 %v451_v47 }
 0x1d5   : > { %v454_v49 = vmul.f32 %v1274_v46, %v453_v48 }
 0x1d7   : > { %v455_v50 = vmul.f32 0.5, %v454_v49 }
 0x1d9   : > { %v456_v51 = vsub.f32 1.5, %v455_v50 }
 0x1da   : > { %v1276_v54 = vpop.eup %1275 }
 0x1db   : > { %v457_v55 = vmul.f32 %v1274_v46, %v456_v51  ;;  %v463_v56 = vmul.f32 %v1276_v54, %v451_v47  ;;  %vm469_vm5 = vweird.f32 %v1276_v54 }
 0x1dc   : > { %vm470_vm7 = vmor %vm468_vm6, %vm469_vm5 }
 0x1dd   : > { %v461_v59 = vsel %vm460_vm4, %v1274_v46, %v457_v55  ;;  %v464_v60 = vmul.f32 %v1276_v54, %v463_v56 }
 0x1de   : > { %v472_v61 = vmul.f32 %v461_v59, %v1606_v53  ;;  %v528_v53 = vperm.slane %v1659_v52, 0 }
 0x1df   : > { %v465_v63 = vmul.f32 0.5, %v464_v60 }
 0x1e0   : > { %v475_v0 = vmul.f32 %v474_v57, %v472_v61 }
 0x1e1   : > { %v466_v1 = vsub.f32 1.5, %v465_v63 }
 0x1e2   : > { %v478_v2 = vadd.f32 %v477_v62, %v475_v0 }
 0x1e3   : > { %v467_v4 = vmul.f32 %v1276_v54, %v466_v1 }
 0x1e4   : > { %547 = vmatmul.f32.vlgmr.msra.gmra.mxu0 %v478_v2  ;;  %570 = vmatmul.f32.vlgmr.msra.gmra.mxu1 %v478_v2 }
 0x1e5   : > { %v471_v5 = vsel %vm470_vm7, %v1276_v54, %v467_v4  ;;  %593 = vmatmul.f32.vlgmr.msra.gmra.mxu2 %v478_v2 }
 0x1e6   : > { %v473_v6 = vmul.f32 %v471_v5, %v1612_v58  ;;  %v431_v58 = vld [vmem:[%s1497_s25 + $0x10] sm:$0xff] }
 0x1e7   : > { %v530_v19 = vperm.slane %v431_v58, 0  ;;  %v694_v58 = vld [vmem:[%s1484_s27 + $0x58] sm:$0xff] }
 0x1e8   : > { %v476_v7 = vmul.f32 %v474_v57, %v473_v6 }
 0x1ea   : > { %v479_v8 = vadd.f32 %v477_v62, %v476_v7 }
 0x1ec   : > { %550 = vmatmul.f32.gmra.mxu0 %v479_v8  ;;  %573 = vmatmul.f32.gmra.mxu1 %v479_v8 }
 0x1ed   : > { %596 = vmatmul.f32.gmra.mxu2 %v479_v8 }
 0x261   : > { %v548_v9 = vpop.f32.mrf.mxu0  ;;  %v571_v10 = vpop.f32.mrf.mxu1 }
 0x262   : > { %v549_v11 = vadd.f32 %v548_v9, %v528_v53  ;;  %v572_v20 = vadd.f32 %v571_v10, %v529_v13 }
 0x264   : > { %727 = vrot.lane.b32.xlu0 %v549_v11, %s1374_s14 }
 0x268   : > { %v594_v14 = vpop.f32.mrf.mxu2 }
 0x269   : > { %v551_v15 = vpop.f32.mrf.mxu0  ;;  %v574_v16 = vpop.f32.mrf.mxu1  ;;  %v595_v22 = vadd.f32 %v594_v14, %v530_v19 }
 0x26a   : > { %v552_v17 = vadd.f32 %v551_v15, %v528_v53  ;;  %v575_v18 = vadd.f32 %v574_v16, %v529_v13 }
 0x26c   : > { %733 = vrot.lane.b32.xlu2 %v575_v18, %s1374_s14  ;;  %1170 = vmatpush.xpose.msk.msrb.mxu2 %vm602_vm8, %v575_v18 }
 0x26d   : > { %729 = vrot.lane.b32.xlu1 %v552_v17, %s1374_s14 }
 0x270   : > { %v597_v21 = vpop.f32.mrf.mxu2  ;;  %1171 = vmatpush.xpose.msk.msrb.mxu2 %vm602_vm8, %v572_v20 }
 0x271   : > { %v598_v23 = vadd.f32 %v597_v21, %v530_v19  ;;  %v693_v21 = vld [vmem:[%s1484_s27 + $0x28] sm:$0xff] }
 0x273   : > { %v1268_v24 = vpack.i.bf16 %v595_v22, %v598_v23  ;;  %684 = vmatpush.msra.mxu3 %v598_v23  ;;  %1172 = vmatmul.msk.f32.vlgmr.msrb.gmra.mxu2 %vm602_vm8, %v549_v11 }
 0x274   : > { %731 = vrot.lane.b32.xlu2 %v572_v20, %s1374_s14 }
 0x275   : > { %685 = vmatpush.msra.mxu3 %v595_v22 }
 0x277   : > { %715 = vmatpush.msrb.mxu3 %v694_v58 }
 0x279   : > { %716 = vmatpush.msrb.mxu3 %v693_v21 }
 0x27b   : > { %1173 = vmatmul.msk.f32.gmra.mxu2 %vm602_vm8, %v552_v17 }
 0x2c6   : > { %v734_v25 = vpop.permute.xlu2 %733 }
 0x2c7   : > { %1178 = vmatpush.xpose.msk.msrb.mxu1 %vm602_vm8, %v734_v25  ;;  %v829_v25 = vld [vmem:[%s1484_s27 + $0x88] sm:$0xff] }
 0x2ce   : > { %v732_v26 = vpop.permute.xlu2 %731 }
 0x2cf   : > { %1179 = vmatpush.xpose.msk.msrb.mxu1 %vm602_vm8, %v732_v26 }
 0x2d6   : > { %v728_v27 = vpop.permute.xlu0 %727 }
 0x2d7   : > { %1180 = vmatmul.msk.f32.vlgmr.msrb.gmra.mxu1 %vm602_vm8, %v728_v27 }
 0x2df   : > { %v730_v28 = vpop.permute.xlu1 %729 }
 0x2e0   : > { %1181 = vmatmul.msk.f32.gmra.mxu1 %vm602_vm8, %v730_v28 }
 0x2f6   : > { %v632_v29 = vpop.f32.mrf.mxu2 }
 0x2f7   : > { %v638_v31 = vmul.f32 0.25, %v632_v29 }
 0x2f9   : > { %v640_v32 = vadd.f32 %v638_v31, %v600_v30  ;;  %v724_v31 = vperm.slane %v1659_v52, 3 }
 0x2fb   : > { %v642_v33 = vsel %vm602_vm8, %v640_v32, -inf }
 0x2fc   : > { %643 = vmax.xlane.f32.xlu2 %v642_v33 }
 0x2fe   : > { %v635_v34 = vpop.f32.mrf.mxu2 }
 0x2ff   : > { %v639_v36 = vmul.f32 0.25, %v635_v34 }
 0x301   : > { %v641_v37 = vadd.f32 %v639_v36, %v601_v35 }
 0x303   : > { %v645_v38 = vsel %vm602_vm8, %v641_v37, -inf }
 0x304   : > { %646 = vmax.xlane.f32.xlu0 %v645_v38 }
 0x354   : > { %v760_v39 = vpop.f32.mrf.mxu1 }
 0x355   : > { %v766_v40 = vmul.f32 0.25, %v760_v39 }
 0x357   : > { %v768_v41 = vadd.f32 %v766_v40, %v600_v30 }
 0x359   : > { %v770_v44 = vsel %vm602_vm8, %v768_v41, -inf }
 0x35a   : > { %771 = vmax.xlane.f32.xlu1 %v770_v44  ;;  %v926_v44 = vld [vmem:[%s1484_s27 + $0x2b8] sm:$0xff] }
 0x35d   : > { %v763_v45 = vpop.f32.mrf.mxu1 }
 0x35e   : > { %v767_v46 = vmul.f32 0.25, %v763_v45 }
 0x360   : > { %v769_v47 = vadd.f32 %v767_v46, %v601_v35 }
 0x362   : > { %v773_v48 = vsel %vm602_vm8, %v769_v47, -inf }
 0x363   : > { %774 = vmax.xlane.f32.xlu2 %v773_v48 }
 0x36f   : > { %v644_v49 = vpop.xlane.xlu2 %643 }
 0x370   : > { %v648_v50 = vsub.f32 %v640_v32, %v644_v49 }
 0x372   : > { %v650_v51 = vmul.f32 1.442695, %v648_v50 }
 0x374   : > { %1277 = vpow2.f32 %v650_v51 }
 0x377   : > { %v647_v54 = vpop.xlane.xlu0 %646 }
 0x378   : > { %v649_v55 = vsub.f32 %v641_v37, %v647_v54 }
 0x37a   : > { %v1278_v56 = vpop.eup %1277  ;;  %v652_v57 = vmul.f32 1.442695, %v649_v55  ;;  %v925_v55 = vld [vmem:[%s1484_s27 + $0x288] sm:$0xff] }
 0x37b   : > { %v654_v59 = vsel %vm602_vm8, %v1278_v56, 0.0 }
 0x37c   : > { %1279 = vpow2.f32 %v652_v57  ;;  %655 = vadd.xlane.f32.xlu2 %v654_v59  ;;  %v923_v57 = vld [vmem:[%s1484_s27 + $0x228] sm:$0xff]  ;;  %v922_v59 = vld [vmem:[%s1484_s27 + $0x1f8] sm:$0xff] }
 0x382   : > { %v1280_v60 = vpop.eup %1279 }
 0x383   : > { %v657_v61 = vsel %vm602_vm8, %v1280_v60, 0.0 }
 0x384   : > { %658 = vadd.xlane.f32.xlu2 %v657_v61  ;;  %v920_v61 = vld [vmem:[%s1484_s27 + $0x198] sm:$0xff] }
 0x39c   : > { %1269 = vrot.lane.b32.xlu2 %v1268_v24, %s1374_s14  ;;  %v830_v24 = vld [vmem:[%s1484_s27 + $0xb8] sm:$0xff] }
 0x39d   : > { %851 = vmatpush.msra.mxu2 %v830_v24 }
 0x39f   : > { %852 = vmatpush.msra.mxu2 %v829_v25 }
 0x3cd   : > { %v772_v62 = vpop.xlane.xlu1 %771 }
 0x3ce   : > { %v776_v63 = vsub.f32 %v768_v41, %v772_v62  ;;  %v927_v41 = vld [vmem:[%s1484_s27 + $0x2e8] sm:$0xff] }
 0x3cf   : > { %v919_v62 = vld [vmem:[%s1484_s27 + $0x168] sm:$0xff] }
 0x3d0   : > { %v778_v0 = vmul.f32 1.442695, %v776_v63  ;;  %v918_v63 = vld [vmem:[%s1484_s27 + $0x138] sm:$0xff] }
 0x3d2   : > { %1281 = vpow2.f32 %v778_v0  ;;  %v917_v0 = vld [vmem:[%s1484_s27 + $0x108] sm:$0xff] }
 0x3d6   : > { %v775_v1 = vpop.xlane.xlu2 %774 }
 0x3d7   : > { %v777_v2 = vsub.f32 %v769_v47, %v775_v1  ;;  %v916_v1 = vld [vmem:[%s1484_s27 + $0xd8] sm:$0xff] }
 0x3d8   : > { %v1282_v4 = vpop.eup %1281 }
 0x3d9   : > { %v780_v5 = vmul.f32 1.442695, %v777_v2  ;;  %v782_v6 = vsel %vm602_vm8, %v1282_v4, 0.0  ;;  %v915_v2 = vld [vmem:[%s1484_s27 + $0xa8] sm:$0xff] }
 0x3da   : > { %783 = vadd.xlane.f32.xlu0 %v782_v6  ;;  %v912_v6 = vld [vmem:[%s1484_s27 + $0x18] sm:$0xff] }
 0x3db   : > { %1283 = vpow2.f32 %v780_v5  ;;  %v913_v5 = vld [vmem:[%s1484_s27 + $0x48] sm:$0xff] }
 0x3e1   : > { %v1284_v7 = vpop.eup %1283 }
 0x3e2   : > { %v785_v8 = vsel %vm602_vm8, %v1284_v7, 0.0 }
 0x3e3   : > { %786 = vadd.xlane.f32.xlu1 %v785_v8 }
 0x3ef   : > { %v656_v53 = vpop.xlane.xlu2 %655 }
 0x3f0   : > { %1285 = vrcp.f32 %v656_v53 }
 0x3f6   : > { %v1286_v9 = vpop.eup %1285 }
 0x3f7   : > { %v659_v10 = vpop.xlane.xlu2 %658  ;;  %v662_v11 = vmul.f32 %v1286_v9, %v1278_v56  ;;  %v924_v56 = vld [vmem:[%s1484_s27 + $0x258] sm:$0xff]  ;;  %v985_v9 = vld [vmem:[%s1484_s27 + $0x2f0] sm:$0xff] }
 0x3f8   : > { %1287 = vrcp.f32 %v659_v10  ;;  %v984_v10 = vld [vmem:[%s1484_s27 + $0x2c0] sm:$0xff]  ;;  %987 = vmatpush.msrb.mxu0 %v985_v9 }
 0x3f9   : > { %1174 = vmatmul.msk.f32.vlgmr.msra.gmra.mxu3 %vm602_vm8, %v662_v11  ;;  %v983_v11 = vld [vmem:[%s1484_s27 + $0x290] sm:$0xff] }
 0x3fa   : > { %929 = vmatpush.msra.mxu3 %v927_v41  ;;  %988 = vmatpush.msrb.mxu0 %v984_v10  ;;  %v979_v41 = vld [vmem:[%s1484_s27 + $0x1d0] sm:$0xff] }
 0x3fc   : > { %930 = vmatpush.msra.mxu3 %v926_v44  ;;  %989 = vmatpush.msrb.mxu0 %v983_v11  ;;  %v978_v44 = vld [vmem:[%s1484_s27 + $0x1a0] sm:$0xff] }
 0x3fe   : > { %v1288_v12 = vpop.eup %1287  ;;  %931 = vmatpush.msra.mxu3 %v925_v55 }
 0x3ff   : > { %v1270_v13 = vpop.permute.xlu2 %1269  ;;  %v663_v14 = vmul.f32 %v1288_v12, %v1280_v60  ;;  %v921_v60 = vld [vmem:[%s1484_s27 + $0x1c8] sm:$0xff] }
 0x400   : > { %v1271_v15 = vunpack.i.l.bf16 %v1270_v13  ;;  %v1272_v16 = vunpack.i.h.bf16 %v1270_v13  ;;  %932 = vmatpush.msra.mxu3 %v924_v56 }
 0x401   : > { %1175 = vmatmul.msk.f32.gmra.mxu3 %vm602_vm8, %v663_v14 }
 0x402   : > { %820 = vmatpush.msra.mxu1 %v1271_v15  ;;  %933 = vmatpush.msra.mxu3 %v923_v57 }
 0x404   : > { %821 = vmatpush.msra.mxu1 %v1272_v16  ;;  %934 = vmatpush.msra.mxu3 %v922_v59 }
 0x406   : > { %935 = vmatpush.msra.mxu3 %v921_v60 }
 0x408   : > { %936 = vmatpush.msra.mxu3 %v920_v61 }
 0x40a   : > { %937 = vmatpush.msra.mxu3 %v919_v62 }
 0x40c   : > { %938 = vmatpush.msra.mxu3 %v918_v63 }
 0x40e   : > { %939 = vmatpush.msra.mxu3 %v917_v0 }
 0x410   : > { %940 = vmatpush.msra.mxu3 %v916_v1 }
 0x412   : > { %941 = vmatpush.msra.mxu3 %v915_v2 }
 0x44d   : > { %v784_v17 = vpop.xlane.xlu0 %783 }
 0x44e   : > { %1289 = vrcp.f32 %v784_v17 }
 0x454   : > { %v1290_v18 = vpop.eup %1289 }
 0x455   : > { %v790_v19 = vmul.f32 %v1290_v18, %v1282_v4  ;;  %v914_v4 = vld [vmem:[%s1484_s27 + $0x78] sm:$0xff] }
 0x456   : > { %v787_v20 = vpop.xlane.xlu1 %786  ;;  %942 = vmatpush.msra.mxu3 %v914_v4 }
 0x457   : > { %1291 = vrcp.f32 %v787_v20  ;;  %1182 = vmatmul.msk.f32.vlgmr.msra.gmra.mxu1 %vm602_vm8, %v790_v19 }
 0x458   : > { %943 = vmatpush.msra.mxu3 %v913_v5 }
 0x45a   : > { %944 = vmatpush.msra.mxu3 %v912_v6 }
 0x45d   : > { %v1292_v22 = vpop.eup %1291 }
 0x45e   : > { %v791_v23 = vmul.f32 %v1292_v22, %v1284_v7  ;;  %v906_v22 = vperm.slane %v1659_v52, 4 }
 0x460   : > { %1183 = vmatmul.msk.f32.gmra.mxu1 %vm602_vm8, %v791_v23 }
 0x47c   : > { %v687_v26 = vpop.f32.mrf.mxu3 }
 0x47d   : > { %1176 = vmatmul.msk.f32.vlgmr.msrb.gmra.mxu3 %vm602_vm8, %v687_v26  ;;  %v909_v26 = vperm.slane %v1659_v52, 5 }
 0x484   : > { %v690_v27 = vpop.f32.mrf.mxu3 }
 0x485   : > { %1177 = vmatmul.msk.f32.gmra.mxu3 %vm602_vm8, %v690_v27 }
 0x4d4   : > { %v823_v28 = vpop.f32.mrf.mxu1 }
 0x4d5   : > { %1184 = vmatmul.msk.f32.vlgmr.msra.gmra.mxu2 %vm602_vm8, %v823_v28 }
 0x4dd   : > { %v826_v29 = vpop.f32.mrf.mxu1 }
 0x4de   : > { %1185 = vmatmul.msk.f32.gmra.mxu2 %vm602_vm8, %v826_v29 }
 0x500   : > { %v718_v30 = vpop.f32.mrf.mxu3 }
 0x501   : > { %v725_v32 = vadd.f32 %v724_v31, %v718_v30 }
 0x508   : > { %v721_v36 = vpop.f32.mrf.mxu3 }
 0x509   : > { %v726_v37 = vadd.f32 %v724_v31, %v721_v36 }
 0x558   : > { %v854_v33 = vpop.f32.mrf.mxu2 }
 0x559   : > { %v860_v34 = vadd.f32 %v854_v33, %v725_v32 }
 0x55b   : > { %v1709_v35 = vadd.f32 %v860_v34, %v1592_v42 }
 0x55d   : > { %864 = vadd.xlane.f32.xlu0 %v1709_v35 }
 0x561   : > { %v857_v38 = vpop.f32.mrf.mxu2 }
 0x562   : > { %v861_v39 = vadd.f32 %v857_v38, %v726_v37  ;;  %v982_v37 = vld [vmem:[%s1484_s27 + $0x260] sm:$0xff]  ;;  %v981_v38 = vld [vmem:[%s1484_s27 + $0x230] sm:$0xff] }
 0x563   : > { %990 = vmatpush.msrb.mxu0 %v982_v37 }
 0x564   : > { %v1713_v40 = vadd.f32 %v861_v39, %v1595_v43  ;;  %v980_v39 = vld [vmem:[%s1484_s27 + $0x200] sm:$0xff] }
 0x565   : > { %991 = vmatpush.msrb.mxu0 %v981_v38 }
 0x566   : > { %866 = vadd.xlane.f32.xlu1 %v1713_v40 }
 0x567   : > { %992 = vmatpush.msrb.mxu0 %v980_v39 }
 0x569   : > { %993 = vmatpush.msrb.mxu0 %v979_v41 }
 0x56b   : > { %994 = vmatpush.msrb.mxu0 %v978_v44 }
 0x5d0   : > { %v865_v45 = vpop.xlane.xlu0 %864 }
 0x5d1   : > { %v868_v42 = vmul.f32 0.03125, %v865_v45  ;;  %v977_v45 = vld [vmem:[%s1484_s27 + $0x170] sm:$0xff] }
 0x5d2   : > { %995 = vmatpush.msrb.mxu0 %v977_v45 }
 0x5d3   : > { %v870_v46 = vsub.f32 %v1709_v35, %v868_v42  ;;  %v976_v42 = vld [vmem:[%s1484_s27 + $0x140] sm:$0xff] }
 0x5d4   : > { %996 = vmatpush.msrb.mxu0 %v976_v42 }
 0x5d5   : > { %v1720_v47 = vmul.f32 %v1492_v3, %v870_v46  ;;  %v975_v46 = vld [vmem:[%s1484_s27 + $0x110] sm:$0xff] }
 0x5d6   : > { %997 = vmatpush.msrb.mxu0 %v975_v46 }
 0x5d7   : > { %v874_v43 = vmul.f32 %v1720_v47, %v1720_v47 }
 0x5d9   : > { %v867_v48 = vpop.xlane.xlu1 %866  ;;  %876 = vadd.xlane.f32.xlu0 %v874_v43  ;;  %v973_v43 = vld [vmem:[%s1484_s27 + $0xb0] sm:$0xff] }
 0x5da   : > { %v869_v49 = vmul.f32 0.03125, %v867_v48  ;;  %v972_v48 = vld [vmem:[%s1484_s27 + $0x80] sm:$0xff] }
 0x5dc   : > { %v871_v50 = vsub.f32 %v1713_v40, %v869_v49  ;;  %v971_v49 = vld [vmem:[%s1484_s27 + $0x50] sm:$0xff] }
 0x5de   : > { %v1726_v51 = vmul.f32 %v1492_v3, %v871_v50  ;;  %v970_v50 = vld [vmem:[%s1484_s27 + $0x20] sm:$0xff] }
 0x5e0   : > { %v875_v54 = vmul.f32 %v1726_v51, %v1726_v51 }
 0x5e2   : > { %878 = vadd.xlane.f32.xlu1 %v875_v54 }
 0x64c   : > { %v877_v7 = vpop.xlane.xlu0 %876 }
 0x64d   : > { %v880_v8 = vmul.f32 0.03125, %v877_v7 }
 0x64f   : > { %v882_v53 = vadd.f32 1e-12, %v880_v8 }
 0x651   : > { %1293 = vrsqrt.f32 %v882_v53  ;;  %vm890_vm10 = vweird.f32 %v882_v53 }
 0x655   : > { %v879_v12 = vpop.xlane.xlu1 %878 }
 0x656   : > { %v881_v13 = vmul.f32 0.03125, %v879_v12 }
 0x657   : > { %v1294_v14 = vpop.eup %1293 }
 0x658   : > { %v885_v15 = vmul.f32 %v1294_v14, %v882_v53  ;;  %v883_v16 = vadd.f32 1e-12, %v881_v13  ;;  %vm891_vm9 = vweird.f32 %v1294_v14  ;;  %v986_v13 = vperm.slane %v1659_v52, 7 }
 0x659   : > { %vm892_vm11 = vmor %vm890_vm10, %vm891_vm9 }
 0x65a   : > { %v886_v58 = vmul.f32 %v1294_v14, %v885_v15  ;;  %1295 = vrsqrt.f32 %v883_v16  ;;  %vm900_vm13 = vweird.f32 %v883_v16 }
 0x65c   : > { %v887_v17 = vmul.f32 0.5, %v886_v58 }
 0x65e   : > { %v888_v18 = vsub.f32 1.5, %v887_v17 }
 0x660   : > { %v1296_v19 = vpop.eup %1295  ;;  %v889_v20 = vmul.f32 %v1294_v14, %v888_v18 }
 0x661   : > { %v895_v21 = vmul.f32 %v1296_v19, %v883_v16  ;;  %vm901_vm12 = vweird.f32 %v1296_v19 }
 0x662   : > { %v893_v23 = vsel %vm892_vm11, %v1294_v14, %v889_v20  ;;  %vm902_vm14 = vmor %vm900_vm13, %vm901_vm12 }
 0x663   : > { %v904_v24 = vmul.f32 %v893_v23, %v1720_v47  ;;  %v896_v25 = vmul.f32 %v1296_v19, %v895_v21  ;;  %v974_v47 = vld [vmem:[%s1484_s27 + $0xe0] sm:$0xff] }
 0x664   : > { %998 = vmatpush.msrb.mxu0 %v974_v47 }
 0x665   : > { %v897_v27 = vmul.f32 0.5, %v896_v25  ;;  %v907_v28 = vmul.f32 %v906_v22, %v904_v24 }
 0x666   : > { %999 = vmatpush.msrb.mxu0 %v973_v43 }
 0x667   : > { %v898_v29 = vsub.f32 1.5, %v897_v27  ;;  %v910_v30 = vadd.f32 %v909_v26, %v907_v28 }
 0x668   : > { %1000 = vmatpush.msrb.mxu0 %v972_v48 }
 0x669   : > { %v899_v31 = vmul.f32 %v1296_v19, %v898_v29  ;;  %945 = vmatmul.f32.vlgmr.msra.gmra.mxu3 %v910_v30 }
 0x66a   : > { %1001 = vmatpush.msrb.mxu0 %v971_v49 }
 0x66b   : > { %v903_v32 = vsel %vm902_vm14, %v1296_v19, %v899_v31 }
 0x66c   : > { %v905_v33 = vmul.f32 %v903_v32, %v1726_v51  ;;  %1002 = vmatpush.msrb.mxu0 %v970_v50  ;;  %v928_v51 = vperm.slane %v1659_v52, 6 }
 0x66e   : > { %v908_v34 = vmul.f32 %v906_v22, %v905_v33 }
 0x670   : > { %v911_v36 = vadd.f32 %v909_v26, %v908_v34 }
 0x672   : > { %948 = vmatmul.f32.gmra.mxu3 %v911_v36 }
 0x6ec   : > { %v946_v54 = vpop.f32.mrf.mxu3 }
 0x6ed   : > { %v947_v55 = vadd.f32 %v946_v54, %v928_v51 }
 0x6ef   : > { %v952_v56 = vmul.f32 %v947_v55, %v947_v55 }
 0x6f1   : > { %v954_v57 = vmul.f32 %v952_v56, %v947_v55 }
 0x6f3   : > { %v956_v59 = vmul.f32 0.044715, %v954_v57 }
 0x6f5   : > { %v958_v60 = vadd.f32 %v956_v59, %v947_v55  ;;  %v949_v61 = vpop.f32.mrf.mxu3 }
 0x6f6   : > { %v950_v62 = vadd.f32 %v949_v61, %v928_v51 }
 0x6f7   : > { %v960_v63 = vmul.f32 0.7978846, %v958_v60 }
 0x6f8   : > { %v953_v0 = vmul.f32 %v950_v62, %v950_v62 }
 0x6f9   : > { %1297 = vtanh.f32 %v960_v63 }
 0x6fa   : > { %v955_v1 = vmul.f32 %v953_v0, %v950_v62 }
 0x6fc   : > { %v957_v2 = vmul.f32 0.044715, %v955_v1 }
 0x6fe   : > { %v959_v4 = vadd.f32 %v957_v2, %v950_v62 }
 0x6ff   : > { %v1298_v5 = vpop.eup %1297 }
 0x700   : > { %v964_v6 = vadd.f32 1.0, %v1298_v5  ;;  %v961_v7 = vmul.f32 0.7978846, %v959_v4 }
 0x702   : > { %v966_v8 = vmul.f32 0.5, %v964_v6  ;;  %1299 = vtanh.f32 %v961_v7 }
 0x704   : > { %v968_v53 = vmul.f32 %v966_v8, %v947_v55 }
 0x706   : > { %1003 = vmatmul.f32.vlgmr.msrb.gmra.mxu0 %v968_v53 }
 0x708   : > { %v1300_v9 = vpop.eup %1299 }
 0x709   : > { %v965_v10 = vadd.f32 1.0, %v1300_v9 }
 0x70b   : > { %v967_v11 = vmul.f32 0.5, %v965_v10 }
 0x70d   : > { %v969_v12 = vmul.f32 %v967_v11, %v950_v62 }
 0x70f   : > { %1006 = vmatmul.f32.gmra.mxu0 %v969_v12 }
 0x783   : > { %v1004_v14 = vpop.f32.mrf.mxu0 }
 0x784   : > { %v1005_v15 = vadd.f32 %v1004_v14, %v986_v13 }
 0x786   : > { %v1010_v16 = vadd.f32 %v1005_v15, %v1709_v35 }
 0x788   : > { %1012 = vst [vmem:[#allocation2] sm:$0xff] %v1010_v16 }
 0x78c   : > { %v1007_v58 = vpop.f32.mrf.mxu0 }
 0x78d   : > { %v1008_v17 = vadd.f32 %v1007_v58, %v986_v13  ;;  %1017 = sbr.rel (%p1186_p7) target bundleno = 2343 (0x927), region = 64 }
 0x78f   : > { %v1011_v18 = vadd.f32 %v1008_v17, %v1713_v40 }
 0x791   : > { %1013 = vst [vmem:[#allocation2 + $0x8] sm:$0xff] %v1011_v18 }
 0x792   : > { %1019 = vadd.xlane.f32.xlu0 %v1010_v16  ;;  %v1082_v19 = vld [vmem:[%s1858_s7 + $0x78] sm:$0xff]  ;;  %v1081_v27 = vld [vmem:[%s1858_s7 + $0x70] sm:$0xff]  ;;  %v1080_v28 = vld [vmem:[%s1858_s7 + $0x68] sm:$0xff] }
 0x793   : > { %1084 = vmatpush.msra.mxu0 %v1082_v19  ;;  %1205 = vmatpush.msra.mxu1 %v1082_v19  ;;  %v1078_v29 = vld [vmem:[%s1858_s7 + $0x58] sm:$0xff]  ;;  %v1077_v30 = vld [vmem:[%s1858_s7 + $0x50] sm:$0xff]  ;;  %v1076_v31 = vld [vmem:[%s1858_s7 + $0x48] sm:$0xff] }
 0x794   : > { %v1075_v32 = vld [vmem:[%s1858_s7 + $0x40] sm:$0xff]  ;;  %v1074_v33 = vld [vmem:[%s1858_s7 + $0x38] sm:$0xff]  ;;  %v1073_v34 = vld [vmem:[%s1858_s7 + $0x30] sm:$0xff] }
 0x795   : > { %1085 = vmatpush.msra.mxu0 %v1081_v27  ;;  %1206 = vmatpush.msra.mxu1 %v1081_v27  ;;  %v1072_v36 = vld [vmem:[%s1858_s7 + $0x28] sm:$0xff]  ;;  %v1071_v37 = vld [vmem:[%s1858_s7 + $0x20] sm:$0xff]  ;;  %v1070_v38 = vld [vmem:[%s1858_s7 + $0x18] sm:$0xff] }
 0x796   : > { %v1069_v39 = vld [vmem:[%s1858_s7 + $0x10] sm:$0xff]  ;;  %v1068_v41 = vld [vmem:[%s1858_s7 + $0x8] sm:$0xff]  ;;  %v1067_v44 = vld [vmem:[%s1858_s7] sm:$0xff] }
 0x797   : > { %1086 = vmatpush.msra.mxu0 %v1080_v28  ;;  %1207 = vmatpush.msra.mxu1 %v1080_v28  ;;  %v1018_v56 = vld [vmem:[%s1857_s6] sm:$0xff] }
 0x798   : > { %v1061_v61 = vperm.slane %v1018_v56, 0  ;;  %v1064_v1 = vperm.slane %v1018_v56, 1  ;;  %v1083_v11 = vperm.slane %v1018_v56, 2 }
 0x79a   : > { %1021 = vadd.xlane.f32.xlu0 %v1011_v18 }
 0x805   : > { %v1020_v52 = vpop.xlane.xlu0 %1019 }
 0x806   : > { %v1023_v20 = vmul.f32 0.03125, %v1020_v52 }
 0x808   : > { %v1025_v35 = vsub.f32 %v1010_v16, %v1023_v20 }
 0x80a   : > { %v1773_v21 = vmul.f32 %v1492_v3, %v1025_v35 }
 0x80c   : > { %v1029_v40 = vmul.f32 %v1773_v21, %v1773_v21 }
 0x80d   : > { %v1022_v22 = vpop.xlane.xlu0 %1021 }
 0x80e   : > { %v1024_v23 = vmul.f32 0.03125, %v1022_v22  ;;  %1031 = vadd.xlane.f32.xlu1 %v1029_v40 }
 0x810   : > { %v1026_v24 = vsub.f32 %v1011_v18, %v1024_v23 }
 0x812   : > { %v1778_v25 = vmul.f32 %v1492_v3, %v1026_v24  ;;  %v1079_v3 = vld [vmem:[%s1858_s7 + $0x60] sm:$0xff] }
 0x813   : > { %1087 = vmatpush.msra.mxu0 %v1079_v3  ;;  %1208 = vmatpush.msra.mxu1 %v1079_v3 }
 0x814   : > { %v1030_v26 = vmul.f32 %v1778_v25, %v1778_v25 }
 0x815   : > { %1088 = vmatpush.msra.mxu0 %v1078_v29  ;;  %1209 = vmatpush.msra.mxu1 %v1078_v29 }
 0x816   : > { %1033 = vadd.xlane.f32.xlu1 %v1030_v26 }
 0x817   : > { %1089 = vmatpush.msra.mxu0 %v1077_v30  ;;  %1210 = vmatpush.msra.mxu1 %v1077_v30 }
 0x819   : > { %1090 = vmatpush.msra.mxu0 %v1076_v31  ;;  %1211 = vmatpush.msra.mxu1 %v1076_v31 }
 0x81b   : > { %1091 = vmatpush.msra.mxu0 %v1075_v32  ;;  %1212 = vmatpush.msra.mxu1 %v1075_v32 }
 0x81d   : > { %1092 = vmatpush.msra.mxu0 %v1074_v33  ;;  %1213 = vmatpush.msra.mxu1 %v1074_v33 }
 0x81f   : > { %1093 = vmatpush.msra.mxu0 %v1073_v34  ;;  %1214 = vmatpush.msra.mxu1 %v1073_v34 }
 0x821   : > { %1094 = vmatpush.msra.mxu0 %v1072_v36  ;;  %1215 = vmatpush.msra.mxu1 %v1072_v36 }
 0x823   : > { %1095 = vmatpush.msra.mxu0 %v1071_v37  ;;  %1216 = vmatpush.msra.mxu1 %v1071_v37 }
 0x825   : > { %1096 = vmatpush.msra.mxu0 %v1070_v38  ;;  %1217 = vmatpush.msra.mxu1 %v1070_v38 }
 0x827   : > { %1097 = vmatpush.msra.mxu0 %v1069_v39  ;;  %1218 = vmatpush.msra.mxu1 %v1069_v39 }
 0x829   : > { %1098 = vmatpush.msra.mxu0 %v1068_v41  ;;  %1219 = vmatpush.msra.mxu1 %v1068_v41 }
 0x82b   : > { %1099 = vmatpush.msra.mxu0 %v1067_v44  ;;  %1220 = vmatpush.msra.mxu1 %v1067_v44 }
 0x881   : > { %v1032_v45 = vpop.xlane.xlu1 %1031 }
 0x882   : > { %v1035_v42 = vmul.f32 0.03125, %v1032_v45 }
 0x884   : > { %v1037_v46 = vadd.f32 1e-12, %v1035_v42 }
 0x886   : > { %1301 = vrsqrt.f32 %v1037_v46  ;;  %vm1045_vm0 = vweird.f32 %v1037_v46 }
 0x889   : > { %v1034_v47 = vpop.xlane.xlu1 %1033 }
 0x88a   : > { %v1036_v43 = vmul.f32 0.03125, %v1034_v47 }
 0x88c   : > { %v1302_v48 = vpop.eup %1301  ;;  %v1038_v49 = vadd.f32 1e-12, %v1036_v43 }
 0x88d   : > { %v1040_v50 = vmul.f32 %v1302_v48, %v1037_v46  ;;  %vm1046_vm15 = vweird.f32 %v1302_v48 }
 0x88e   : > { %1303 = vrsqrt.f32 %v1038_v49  ;;  %vm1047_vm1 = vmor %vm1045_vm0, %vm1046_vm15  ;;  %vm1055_vm3 = vweird.f32 %v1038_v49 }
 0x88f   : > { %v1041_v51 = vmul.f32 %v1302_v48, %v1040_v50 }
 0x891   : > { %v1042_v54 = vmul.f32 0.5, %v1041_v51 }
 0x893   : > { %v1043_v55 = vsub.f32 1.5, %v1042_v54 }
 0x894   : > { %v1304_v57 = vpop.eup %1303 }
 0x895   : > { %v1044_v59 = vmul.f32 %v1302_v48, %v1043_v55  ;;  %v1050_v60 = vmul.f32 %v1304_v57, %v1038_v49  ;;  %vm1056_vm2 = vweird.f32 %v1304_v57 }
 0x896   : > { %vm1057_vm4 = vmor %vm1055_vm3, %vm1056_vm2 }
 0x897   : > { %v1051_v62 = vmul.f32 %v1304_v57, %v1050_v60  ;;  %v1048_v63 = vsel %vm1047_vm1, %v1302_v48, %v1044_v59 }
 0x898   : > { %v1059_v0 = vmul.f32 %v1048_v63, %v1773_v21 }
 0x899   : > { %v1052_v2 = vmul.f32 0.5, %v1051_v62 }
 0x89a   : > { %v1062_v4 = vmul.f32 %v1061_v61, %v1059_v0 }
 0x89b   : > { %v1053_v5 = vsub.f32 1.5, %v1052_v2 }
 0x89c   : > { %v1065_v6 = vadd.f32 %v1064_v1, %v1062_v4 }
 0x89d   : > { %v1054_v7 = vmul.f32 %v1304_v57, %v1053_v5 }
 0x89e   : > { %1100 = vmatmul.f32.vlgmr.msra.gmra.mxu0 %v1065_v6 }
 0x89f   : > { %v1058_v8 = vsel %vm1057_vm4, %v1304_v57, %v1054_v7 }
 0x8a0   : > { %v1060_v53 = vmul.f32 %v1058_v8, %v1778_v25 }
 0x8a2   : > { %v1063_v9 = vmul.f32 %v1061_v61, %v1060_v53 }
 0x8a4   : > { %v1066_v10 = vadd.f32 %v1064_v1, %v1063_v9 }
 0x8a6   : > { %1103 = vmatmul.f32.vlgmr.msra.gmra.mxu1 %v1066_v10 }
 0x91b   : > { %v1101_v12 = vpop.f32.mrf.mxu0 }
 0x91c   : > { %v1102_v13 = vadd.f32 %v1101_v12, %v1083_v11 }
 0x91e   : > { %1107 = vst [vmem:[%s1859_s8] sm:$0xff] %v1102_v13 }
 0x923   : > { %v1104_v14 = vpop.f32.mrf.mxu1 }
 0x924   : > { %v1105_v15 = vadd.f32 %v1104_v14, %v1083_v11 }
 0x926   : > { %1108 = vst [vmem:[%s1859_s8 + $0x8] sm:$0xff] %v1105_v15 }
 0x927 PF: > { %p18_p9 = scmp.ge.s32.totalorder %s1442_s10, 4   ;;  %s1862_s27 = smov %s1361_s28 }
 0x928   : > { %s1863_s28 = smov %s1365_s29  ;;  %s1864_s29 = smov %s1452_s13 }
 0x929   : > { %s1865_s30 = smov %s1442_s10  ;;  %20 = sbr.rel (!%p18_p9) target bundleno = 3 (0x3), region = 99 }
 0x92e   :  { %1120 = vsyncpa [#allocation4], 1 }
 0x92f   :  { %1122 = vsyncpa [#allocation4 + $0x1], 1 }

</bundles_post_ra>
